<compile_context>
chip_gen: v6e
topology: v6e:2x2x1
jax: 0.10.0
libtpu: 0.0.40
codegen_flags: <defaults>
</compile_context>

<pallas_src>
import jax
import jax.numpy as jnp
from jax.experimental import pallas as pl
from jax.experimental.pallas import tpu as pltpu

P_DIM = 32          # power-vector width (Linear(32 + feat, ...))
HIDDEN = 256
NB_FEAT = 16        # per-module feature size (mod_info[i]['nb_feat'])
NUM_MODULE_TYPES = 2


def _round_up(x, m):
    return -(-x // m) * m


def _cascade_kernel(counts_ref,                 # SMEM [num_bt, N] int32 (scalar prefetch)
                    code_ref,                   # [1, TB, 1] int32  active type code @ pos n
                    feats_ref,                  # [1, TB, F] bf16   features @ pos n
                    p_in_ref,                   # [TB, 32]  f32     input powers (batch tile)
                    w0p_ref,                    # [32, T*H] bf16    fc0 weights, p half (both types)
                    w0f_ref,                    # [F,  T*H] bf16    fc0 weights, feat half
                    b0_ref,                     # [1,  T*H] f32
                    w1_ref, b1_ref,             # [T,H,H] bf16, [T,1,H] f32
                    w2_ref, b2_ref,             # [T,H,H] bf16, [T,1,H] f32
                    w3_ref, b3_ref,             # [T,H,32] bf16, [T,1,32] f32
                    out_ref,                    # [TB, 32] f32 (written once per batch tile)
                    p_acc):                     # VMEM scratch [TB, 32] f32 accumulator
    b = pl.program_id(0)
    n = pl.program_id(1)

    @pl.when(n == 0)
    def _init():
        p_acc[...] = p_in_ref[...]

    @pl.when(counts_ref[b, n] > 0)              # skip positions with no active row in this tile
    def _step():
        p_prev = p_acc[...]                                     # [TB, 32] f32
        f = feats_ref[0]                                        # [TB, F]  bf16
        code = code_ref[0]                                      # [TB, 1]  int32

        # fc0 merged over both module types (two wide matmuls, split concat) + relu
        h0 = (jnp.dot(p_prev.astype(jnp.bfloat16), w0p_ref[...],
                      preferred_element_type=jnp.float32)
              + jnp.dot(f, w0f_ref[...], preferred_element_type=jnp.float32)
              + b0_ref[...])
        h0 = jnp.maximum(h0, 0.0)                               # [TB, T*H]

        new_p = p_prev
        for i in range(NUM_MODULE_TYPES):       # static unroll, single basic block -> MXU overlap
            h = h0[:, i * HIDDEN:(i + 1) * HIDDEN]              # [TB, H]
            # fc1 (+ Dropout in training; identity in eval)
            h = jnp.dot(h.astype(jnp.bfloat16), w1_ref[i],
                        preferred_element_type=jnp.float32) + b1_ref[i]
            # TODO(synk): Dropout(p=0.5) after fc1 is training-only; eval-mode identity here.
            # fc2 + relu
            h = jnp.maximum(
                jnp.dot(h.astype(jnp.bfloat16), w2_ref[i],
                        preferred_element_type=jnp.float32) + b2_ref[i], 0.0)
            # fc3
            y = jnp.dot(h.astype(jnp.bfloat16), w3_ref[i],
                        preferred_element_type=jnp.float32) + b3_ref[i]
            new_p = jnp.where(code == i, y, new_p)              # per-row select
        p_acc[...] = new_p

    @pl.when(n == pl.num_programs(1) - 1)
    def _finalize():
        out_ref[...] = jnp.maximum(p_acc[...], 0.0)             # eval-mode final relu


@jax.jit
def cascade_forward(mod_id_seq, mod_feat_padded, seq_len, p_in, params):
    """JAX equivalent of PyTorchModel.forward (eval mode), fully fused on TPU.

    mod_id_seq:      [B, N] int32   module-type id per cascade position
    mod_feat_padded: [B, N, F]      per-position features (zero padded)
    seq_len:         [B]   int32    true cascade length per sample
    p_in:            [B, 32]        input powers
    """
    B, N = mod_id_seq.shape
    F = mod_feat_padded.shape[-1]
    T, H = NUM_MODULE_TYPES, HIDDEN

    # Batch tile: fill the MXU M dimension when the batch allows; pad to a tile multiple.
    TB = 256 if B >= 256 else _round_up(max(B, 8), 8)
    Bp = _round_up(B, TB)
    num_bt = Bp // TB
    pad = Bp - B
    if pad:
        mod_id_seq = jnp.pad(mod_id_seq, ((0, pad), (0, 0)))
        mod_feat_padded = jnp.pad(mod_feat_padded, ((0, pad), (0, 0), (0, 0)))
        seq_len = jnp.pad(seq_len, (0, pad))          # padded rows: seq_len 0 -> never active
        p_in = jnp.pad(p_in, ((0, pad), (0, 0)))

    pos = jnp.arange(N, dtype=jnp.int32)
    in_seq = seq_len[:, None] > pos[None, :]                              # [Bp, N] bool
    code = jnp.where(in_seq, mod_id_seq.astype(jnp.int32), -1)            # [Bp, N]
    counts = in_seq.reshape(num_bt, TB, N).sum(1).astype(jnp.int32)       # [num_bt, N] -> SMEM
    code = jnp.transpose(code)[:, :, None]                                # [N, Bp, 1]
    feats = jnp.transpose(mod_feat_padded, (1, 0, 2)).astype(jnp.bfloat16)  # [N, Bp, F] bf16

    in_specs = [
        pl.BlockSpec((1, TB, 1),     lambda b, n, c: (n, b, 0)),   # code  (streamed per step)
        pl.BlockSpec((1, TB, F),     lambda b, n, c: (n, b, 0)),   # feats (streamed per step)
        pl.BlockSpec((TB, P_DIM),    lambda b, n, c: (b, 0)),      # p_in  (per batch tile)
        pl.BlockSpec((P_DIM, T * H), lambda b, n, c: (0, 0)),      # w0p   (resident)
        pl.BlockSpec((F, T * H),     lambda b, n, c: (0, 0)),      # w0f
        pl.BlockSpec((1, T * H),     lambda b, n, c: (0, 0)),      # b0
        pl.BlockSpec((T, H, H),      lambda b, n, c: (0, 0, 0)),   # w1
        pl.BlockSpec((T, 1, H),      lambda b, n, c: (0, 0, 0)),   # b1
        pl.BlockSpec((T, H, H),      lambda b, n, c: (0, 0, 0)),   # w2
        pl.BlockSpec((T, 1, H),      lambda b, n, c: (0, 0, 0)),   # b2
        pl.BlockSpec((T, H, P_DIM),  lambda b, n, c: (0, 0, 0)),   # w3
        pl.BlockSpec((T, 1, P_DIM),  lambda b, n, c: (0, 0, 0)),   # b3
    ]

    out = pl.pallas_call(
        _cascade_kernel,
        out_shape=jax.ShapeDtypeStruct((Bp, P_DIM), jnp.float32),
        grid_spec=pltpu.PrefetchScalarGridSpec(
            num_scalar_prefetch=1,
            grid=(num_bt, N),
            in_specs=in_specs,
            out_specs=pl.BlockSpec((TB, P_DIM), lambda b, n, c: (b, 0)),
            scratch_shapes=[pltpu.VMEM((TB, P_DIM), jnp.float32)]),
        compiler_params=pltpu.CompilerParams(
            dimension_semantics=("parallel", "arbitrary")),
    )(counts, code, feats, p_in,
      params["w0p"], params["w0f"], params["b0"],
      params["w1"], params["b1"],
      params["w2"], params["b2"],
      params["w3"], params["b3"])
    return out[:B]


def init_stacked_params(key, feat_size, num_types):
    """torch.nn.Linear-style init (uniform +/- 1/sqrt(fan_in)); fc0 weights are
    split into [p | feat] halves and concatenated over module types along the
    output dim ([32, T*H] / [F, T*H]); fc1..fc3 are stacked over types.
    Weights stored bf16 (f32 accumulation), biases f32."""
    dims = [(P_DIM + feat_size, HIDDEN), (HIDDEN, HIDDEN),
            (HIDDEN, HIDDEN), (HIDDEN, P_DIM)]
    per_type = []
    for _ in range(num_types):
        layers = {}
        for li, (din, dout) in enumerate(dims):
            key, kw, kb = jax.random.split(key, 3)
            bound = 1.0 / jnp.sqrt(float(din))
            layers[f"w{li}"] = jax.random.uniform(kw, (din, dout), jnp.float32, -bound, bound)
            layers[f"b{li}"] = jax.random.uniform(kb, (1, dout), jnp.float32, -bound, bound)
        per_type.append(layers)

    stack = lambda name: jnp.stack([p[name] for p in per_type])          # [T, ...]
    cat = lambda name: jnp.concatenate([p[name] for p in per_type], -1)  # [..., T*H]
    w0 = cat("w0")                                                       # [32+F, T*H]
    return {
        "w0p": w0[:P_DIM, :].astype(jnp.bfloat16),
        "w0f": w0[P_DIM:, :].astype(jnp.bfloat16),
        "b0": cat("b0"),
        "w1": stack("w1").astype(jnp.bfloat16),
        "b1": stack("b1"),
        "w2": stack("w2").astype(jnp.bfloat16),
        "b2": stack("b2"),
        "w3": stack("w3").astype(jnp.bfloat16),
        "b3": stack("b3"),
    }


# ---------------- pure-JAX reference (same bf16-dot / f32-accum numerics) -----
def _mlp_ref(p, f, params, i):
    H = HIDDEN
    w0p = params["w0p"][:, i * H:(i + 1) * H]
    w0f = params["w0f"][:, i * H:(i + 1) * H]
    b0 = params["b0"][:, i * H:(i + 1) * H]
    h = (jnp.dot(p.astype(jnp.bfloat16), w0p, preferred_element_type=jnp.float32)
         + jnp.dot(f.astype(jnp.bfloat16), w0f, preferred_element_type=jnp.float32)
         + b0)
    h = jnp.maximum(h, 0.0)
    h = jnp.dot(h.astype(jnp.bfloat16), params["w1"][i],
                preferred_element_type=jnp.float32) + params["b1"][i]
    h = jnp.maximum(jnp.dot(h.astype(jnp.bfloat16), params["w2"][i],
                            preferred_element_type=jnp.float32) + params["b2"][i], 0.0)
    return jnp.dot(h.astype(jnp.bfloat16), params["w3"][i],
                   preferred_element_type=jnp.float32) + params["b3"][i]


def cascade_reference(mod_id_seq, mod_feat_padded, seq_len, p_in, params):
    B, N = mod_id_seq.shape
    p_out = p_in
    for n in range(N):
        f = mod_feat_padded[:, n, :]
        for i in range(NUM_MODULE_TYPES):
            msk = (mod_id_seq[:, n] == i) & (seq_len > n)
            y = _mlp_ref(p_out, f, params, i)
            p_out = jnp.where(msk[:, None], y, p_out)
    return jnp.maximum(p_out, 0.0)


if __name__ == "__main__":
    key = jax.random.PRNGKey(0)
    key, kp = jax.random.split(key)
    params = init_stacked_params(kp, NB_FEAT, NUM_MODULE_TYPES)

    B, MAX_LEN = 8, 3
    key, k_id, k_feat, k_p = jax.random.split(key, 4)
    mod_id_seq = jax.random.randint(k_id, (B, MAX_LEN), 0, NUM_MODULE_TYPES, dtype=jnp.int32)
    seq_len = jnp.array([3, 2, 3, 1, 3, 2, 3, 3], dtype=jnp.int32)   # ragged lengths
    mod_feat_padded = jax.random.normal(k_feat, (B, MAX_LEN, NB_FEAT), jnp.float32)
    # zero out padded positions (mimics pad_sequence padding)
    pos = jnp.arange(MAX_LEN)[None, :, None]
    mod_feat_padded = jnp.where(pos < seq_len[:, None, None], mod_feat_padded, 0.0)
    p_in = jax.random.normal(k_p, (B, P_DIM), jnp.float32)

    out = cascade_forward(mod_id_seq, mod_feat_padded, seq_len, p_in, params)
    jax.block_until_ready(out)
    assert out.shape == (B, P_DIM) and out.dtype == jnp.float32
    assert bool(jnp.all(jnp.isfinite(out)))

    ref = cascade_reference(mod_id_seq, mod_feat_padded, seq_len, p_in, params)
    assert bool(jnp.allclose(out, ref, rtol=2e-2, atol=2e-2)), \
        float(jnp.max(jnp.abs(out - ref)))
    print("KERNEL_OK")
</pallas_src>

<mosaic_0001>
module attributes {stable_mosaic.version = 11 : i64} {
  func.func @_cascade_kernel(%arg0: i32, %arg1: i32, %arg2: memref<1x3xi32, #tpu.memory_space<smem>>, %arg3: memref<1x8x1xi32, #tpu.memory_space<vmem>>, %arg4: memref<1x8x16xbf16, #tpu.memory_space<vmem>>, %arg5: memref<8x32xf32, #tpu.memory_space<vmem>>, %arg6: memref<32x512xbf16, #tpu.memory_space<vmem>>, %arg7: memref<16x512xbf16, #tpu.memory_space<vmem>>, %arg8: memref<1x512xf32, #tpu.memory_space<vmem>>, %arg9: memref<2x256x256xbf16, #tpu.memory_space<vmem>>, %arg10: memref<2x1x256xf32, #tpu.memory_space<vmem>>, %arg11: memref<2x256x256xbf16, #tpu.memory_space<vmem>>, %arg12: memref<2x1x256xf32, #tpu.memory_space<vmem>>, %arg13: memref<2x256x32xbf16, #tpu.memory_space<vmem>>, %arg14: memref<2x1x32xf32, #tpu.memory_space<vmem>>, %arg15: memref<8x32xf32, #tpu.memory_space<vmem>>, %arg16: memref<8x32xf32, #tpu.memory_space<vmem>>) attributes {dimension_semantics = [#tpu.dimension_semantics<parallel>, #tpu.dimension_semantics<arbitrary>], iteration_bounds = array<i64: 1, 3>, scalar_prefetch = 1 : i64, scratch_operands = 1 : i64, tpu.core_type = #tpu.core_type<tc>, window_params = [{transform_indices = @transform_0, window_bounds = array<i64: 1, 8, 1>}, {transform_indices = @transform_1, window_bounds = array<i64: 1, 8, 16>}, {transform_indices = @transform_2, window_bounds = array<i64: 8, 32>}, {pipeline_mode = #tpu.pipeline_mode<synchronous>, transform_indices = @transform_3, window_bounds = array<i64: 32, 512>}, {pipeline_mode = #tpu.pipeline_mode<synchronous>, transform_indices = @transform_4, window_bounds = array<i64: 16, 512>}, {pipeline_mode = #tpu.pipeline_mode<synchronous>, transform_indices = @transform_5, window_bounds = array<i64: 1, 512>}, {pipeline_mode = #tpu.pipeline_mode<synchronous>, transform_indices = @transform_6, window_bounds = array<i64: 2, 256, 256>}, {pipeline_mode = #tpu.pipeline_mode<synchronous>, transform_indices = @transform_7, window_bounds = array<i64: 2, 1, 256>}, {pipeline_mode = #tpu.pipeline_mode<synchronous>, transform_indices = @transform_8, window_bounds = array<i64: 2, 256, 256>}, {pipeline_mode = #tpu.pipeline_mode<synchronous>, transform_indices = @transform_9, window_bounds = array<i64: 2, 1, 256>}, {pipeline_mode = #tpu.pipeline_mode<synchronous>, transform_indices = @transform_10, window_bounds = array<i64: 2, 256, 32>}, {pipeline_mode = #tpu.pipeline_mode<synchronous>, transform_indices = @transform_11, window_bounds = array<i64: 2, 1, 32>}, {transform_indices = @transform_12, window_bounds = array<i64: 8, 32>}]} {
    %c0_i32 = arith.constant 0 : i32
    %0 = arith.cmpi eq, %arg1, %c0_i32 : i32
    %1 = arith.extui %0 : i1 to i32
    %c0_i32_0 = arith.constant 0 : i32
    %2 = arith.cmpi ne, %1, %c0_i32_0 : i32
    scf.if %2 {
      %c0 = arith.constant 0 : index
      %c0_4 = arith.constant 0 : index
      %12 = vector.load %arg5[%c0, %c0_4] : memref<8x32xf32, #tpu.memory_space<vmem>>, vector<8x32xf32>
      %c0_5 = arith.constant 0 : index
      %c0_6 = arith.constant 0 : index
      %13 = vector.load %arg16[%c0_5, %c0_6] : memref<8x32xf32, #tpu.memory_space<vmem>>, vector<8x32xf32>
      tpu.vector_store %arg16[%c0_5, %c0_6], %12 {strides = array<i32>} : memref<8x32xf32, #tpu.memory_space<vmem>>, vector<8x32xf32>,
    } else {
    }
    %3 = arith.index_cast %arg0 : i32 to index
    %4 = arith.index_cast %arg1 : i32 to index
    %5 = memref.load %arg2[%3, %4] : memref<1x3xi32, #tpu.memory_space<smem>>
    %c0_i32_1 = arith.constant 0 : i32
    %6 = arith.cmpi sgt, %5, %c0_i32_1 : i32
    %7 = arith.extui %6 : i1 to i32
    %c0_i32_2 = arith.constant 0 : i32
    %8 = arith.cmpi ne, %7, %c0_i32_2 : i32
    scf.if %8 {
      %c0 = arith.constant 0 : index
      %c0_4 = arith.constant 0 : index
      %12 = vector.load %arg16[%c0, %c0_4] : memref<8x32xf32, #tpu.memory_space<vmem>>, vector<8x32xf32>
      %c0_5 = arith.constant 0 : index
      %c0_6 = arith.constant 0 : index
      %c0_7 = arith.constant 0 : index
      %13 = vector.load %arg4[%c0_5, %c0_6, %c0_7] : memref<1x8x16xbf16, #tpu.memory_space<vmem>>, vector<1x8x16xbf16>
      %14 = vector.shape_cast %13 : vector<1x8x16xbf16> to vector<8x16xbf16>
      %c0_8 = arith.constant 0 : index
      %c0_9 = arith.constant 0 : index
      %c0_10 = arith.constant 0 : index
      %15 = vector.load %arg3[%c0_8, %c0_9, %c0_10] : memref<1x8x1xi32, #tpu.memory_space<vmem>>, vector<1x8x1xi32>
      %16 = vector.shape_cast %15 : vector<1x8x1xi32> to vector<8x1xi32>
      %17 = arith.truncf %12 : vector<8x32xf32> to vector<8x32xbf16>
      %c0_11 = arith.constant 0 : index
      %c0_12 = arith.constant 0 : index
      %18 = vector.load %arg6[%c0_11, %c0_12] : memref<32x512xbf16, #tpu.memory_space<vmem>>, vector<32x512xbf16>
      %cst = arith.constant dense<0.000000e+00> : vector<8x512xf32>
      %19 = tpu.matmul %17, %18, %cst {dimension_numbers = #tpu.dot_dimension_numbers<[1], [0], [0], [1], [0, 0, 1, 1], [], []>} : vector<8x32xbf16>, vector<32x512xbf16>, vector<8x512xf32> -> vector<8x512xf32>
      %c0_13 = arith.constant 0 : index
      %c0_14 = arith.constant 0 : index
      %20 = vector.load %arg7[%c0_13, %c0_14] : memref<16x512xbf16, #tpu.memory_space<vmem>>, vector<16x512xbf16>
      %cst_15 = arith.constant dense<0.000000e+00> : vector<8x512xf32>
      %21 = tpu.matmul %14, %20, %cst_15 {dimension_numbers = #tpu.dot_dimension_numbers<[1], [0], [0], [1], [0, 0, 1, 1], [], []>} : vector<8x16xbf16>, vector<16x512xbf16>, vector<8x512xf32> -> vector<8x512xf32>
      %22 = arith.addf %19, %21 : vector<8x512xf32>
      %c0_16 = arith.constant 0 : index
      %c0_17 = arith.constant 0 : index
      %23 = vector.load %arg8[%c0_16, %c0_17] : memref<1x512xf32, #tpu.memory_space<vmem>>, vector<1x512xf32>
      %24 = vector.broadcast %23 : vector<1x512xf32> to vector<8x512xf32>
      %25 = arith.addf %22, %24 : vector<8x512xf32>
      %cst_18 = arith.constant 0.000000e+00 : f32
      %26 = vector.broadcast %cst_18 : f32 to vector<8x512xf32>
      %27 = arith.maximumf %25, %26 : vector<8x512xf32>
      %28 = vector.extract_strided_slice %27 {offsets = [0, 0], sizes = [8, 256], strides = [1, 1]} : vector<8x512xf32> to vector<8x256xf32>
      %29 = arith.truncf %28 : vector<8x256xf32> to vector<8x256xbf16>
      %c0_19 = arith.constant 0 : index
      %c0_20 = arith.constant 0 : index
      %c0_21 = arith.constant 0 : index
      %30 = vector.load %arg9[%c0_19, %c0_20, %c0_21] : memref<2x256x256xbf16, #tpu.memory_space<vmem>>, vector<1x256x256xbf16>
      %31 = vector.shape_cast %30 : vector<1x256x256xbf16> to vector<256x256xbf16>
      %cst_22 = arith.constant dense<0.000000e+00> : vector<8x256xf32>
      %32 = tpu.matmul %29, %31, %cst_22 {dimension_numbers = #tpu.dot_dimension_numbers<[1], [0], [0], [1], [0, 0, 1, 1], [], []>} : vector<8x256xbf16>, vector<256x256xbf16>, vector<8x256xf32> -> vector<8x256xf32>
      %c0_23 = arith.constant 0 : index
      %c0_24 = arith.constant 0 : index
      %c0_25 = arith.constant 0 : index
      %33 = vector.load %arg10[%c0_23, %c0_24, %c0_25] : memref<2x1x256xf32, #tpu.memory_space<vmem>>, vector<1x1x256xf32>
      %34 = vector.shape_cast %33 : vector<1x1x256xf32> to vector<1x256xf32>
      %35 = vector.broadcast %34 : vector<1x256xf32> to vector<8x256xf32>
      %36 = arith.addf %32, %35 : vector<8x256xf32>
      %37 = arith.truncf %36 : vector<8x256xf32> to vector<8x256xbf16>
      %c0_26 = arith.constant 0 : index
      %c0_27 = arith.constant 0 : index
      %c0_28 = arith.constant 0 : index
      %38 = vector.load %arg11[%c0_26, %c0_27, %c0_28] : memref<2x256x256xbf16, #tpu.memory_space<vmem>>, vector<1x256x256xbf16>
      %39 = vector.shape_cast %38 : vector<1x256x256xbf16> to vector<256x256xbf16>
      %cst_29 = arith.constant dense<0.000000e+00> : vector<8x256xf32>
      %40 = tpu.matmul %37, %39, %cst_29 {dimension_numbers = #tpu.dot_dimension_numbers<[1], [0], [0], [1], [0, 0, 1, 1], [], []>} : vector<8x256xbf16>, vector<256x256xbf16>, vector<8x256xf32> -> vector<8x256xf32>
      %c0_30 = arith.constant 0 : index
      %c0_31 = arith.constant 0 : index
      %c0_32 = arith.constant 0 : index
      %41 = vector.load %arg12[%c0_30, %c0_31, %c0_32] : memref<2x1x256xf32, #tpu.memory_space<vmem>>, vector<1x1x256xf32>
      %42 = vector.shape_cast %41 : vector<1x1x256xf32> to vector<1x256xf32>
      %43 = vector.broadcast %42 : vector<1x256xf32> to vector<8x256xf32>
      %44 = arith.addf %40, %43 : vector<8x256xf32>
      %cst_33 = arith.constant 0.000000e+00 : f32
      %45 = vector.broadcast %cst_33 : f32 to vector<8x256xf32>
      %46 = arith.maximumf %44, %45 : vector<8x256xf32>
      %47 = arith.truncf %46 : vector<8x256xf32> to vector<8x256xbf16>
      %c0_34 = arith.constant 0 : index
      %c0_35 = arith.constant 0 : index
      %c0_36 = arith.constant 0 : index
      %48 = vector.load %arg13[%c0_34, %c0_35, %c0_36] : memref<2x256x32xbf16, #tpu.memory_space<vmem>>, vector<1x256x32xbf16>
      %49 = vector.shape_cast %48 : vector<1x256x32xbf16> to vector<256x32xbf16>
      %cst_37 = arith.constant dense<0.000000e+00> : vector<8x32xf32>
      %50 = tpu.matmul %47, %49, %cst_37 {dimension_numbers = #tpu.dot_dimension_numbers<[1], [0], [0], [1], [0, 0, 1, 1], [], []>} : vector<8x256xbf16>, vector<256x32xbf16>, vector<8x32xf32> -> vector<8x32xf32>
      %c0_38 = arith.constant 0 : index
      %c0_39 = arith.constant 0 : index
      %c0_40 = arith.constant 0 : index
      %51 = vector.load %arg14[%c0_38, %c0_39, %c0_40] : memref<2x1x32xf32, #tpu.memory_space<vmem>>, vector<1x1x32xf32>
      %52 = vector.shape_cast %51 : vector<1x1x32xf32> to vector<1x32xf32>
      %53 = vector.broadcast %52 : vector<1x32xf32> to vector<8x32xf32>
      %54 = arith.addf %50, %53 : vector<8x32xf32>
      %c0_i32_41 = arith.constant 0 : i32
      %55 = vector.broadcast %c0_i32_41 : i32 to vector<8x1xi32>
      %56 = arith.cmpi eq, %16, %55 : vector<8x1xi32>
      %57 = vector.shape_cast %56 : vector<8x1xi1> to vector<8x1xi1>
      %58 = vector.broadcast %57 : vector<8x1xi1> to vector<8x32xi1>
      %59 = arith.select %58, %54, %12 : vector<8x32xi1>, vector<8x32xf32>
      %60 = vector.extract_strided_slice %27 {offsets = [0, 256], sizes = [8, 256], strides = [1, 1]} : vector<8x512xf32> to vector<8x256xf32>
      %61 = arith.truncf %60 : vector<8x256xf32> to vector<8x256xbf16>
      %c1 = arith.constant 1 : index
      %c0_42 = arith.constant 0 : index
      %c0_43 = arith.constant 0 : index
      %62 = vector.load %arg9[%c1, %c0_42, %c0_43] : memref<2x256x256xbf16, #tpu.memory_space<vmem>>, vector<1x256x256xbf16>
      %63 = vector.shape_cast %62 : vector<1x256x256xbf16> to vector<256x256xbf16>
      %cst_44 = arith.constant dense<0.000000e+00> : vector<8x256xf32>
      %64 = tpu.matmul %61, %63, %cst_44 {dimension_numbers = #tpu.dot_dimension_numbers<[1], [0], [0], [1], [0, 0, 1, 1], [], []>} : vector<8x256xbf16>, vector<256x256xbf16>, vector<8x256xf32> -> vector<8x256xf32>
      %c1_45 = arith.constant 1 : index
      %c0_46 = arith.constant 0 : index
      %c0_47 = arith.constant 0 : index
      %65 = vector.load %arg10[%c1_45, %c0_46, %c0_47] : memref<2x1x256xf32, #tpu.memory_space<vmem>>, vector<1x1x256xf32>
      %66 = vector.shape_cast %65 : vector<1x1x256xf32> to vector<1x256xf32>
      %67 = vector.broadcast %66 : vector<1x256xf32> to vector<8x256xf32>
      %68 = arith.addf %64, %67 : vector<8x256xf32>
      %69 = arith.truncf %68 : vector<8x256xf32> to vector<8x256xbf16>
      %c1_48 = arith.constant 1 : index
      %c0_49 = arith.constant 0 : index
      %c0_50 = arith.constant 0 : index
      %70 = vector.load %arg11[%c1_48, %c0_49, %c0_50] : memref<2x256x256xbf16, #tpu.memory_space<vmem>>, vector<1x256x256xbf16>
      %71 = vector.shape_cast %70 : vector<1x256x256xbf16> to vector<256x256xbf16>
      %cst_51 = arith.constant dense<0.000000e+00> : vector<8x256xf32>
      %72 = tpu.matmul %69, %71, %cst_51 {dimension_numbers = #tpu.dot_dimension_numbers<[1], [0], [0], [1], [0, 0, 1, 1], [], []>} : vector<8x256xbf16>, vector<256x256xbf16>, vector<8x256xf32> -> vector<8x256xf32>
      %c1_52 = arith.constant 1 : index
      %c0_53 = arith.constant 0 : index
      %c0_54 = arith.constant 0 : index
      %73 = vector.load %arg12[%c1_52, %c0_53, %c0_54] : memref<2x1x256xf32, #tpu.memory_space<vmem>>, vector<1x1x256xf32>
      %74 = vector.shape_cast %73 : vector<1x1x256xf32> to vector<1x256xf32>
      %75 = vector.broadcast %74 : vector<1x256xf32> to vector<8x256xf32>
      %76 = arith.addf %72, %75 : vector<8x256xf32>
      %cst_55 = arith.constant 0.000000e+00 : f32
      %77 = vector.broadcast %cst_55 : f32 to vector<8x256xf32>
      %78 = arith.maximumf %76, %77 : vector<8x256xf32>
      %79 = arith.truncf %78 : vector<8x256xf32> to vector<8x256xbf16>
      %c1_56 = arith.constant 1 : index
      %c0_57 = arith.constant 0 : index
      %c0_58 = arith.constant 0 : index
      %80 = vector.load %arg13[%c1_56, %c0_57, %c0_58] : memref<2x256x32xbf16, #tpu.memory_space<vmem>>, vector<1x256x32xbf16>
      %81 = vector.shape_cast %80 : vector<1x256x32xbf16> to vector<256x32xbf16>
      %cst_59 = arith.constant dense<0.000000e+00> : vector<8x32xf32>
      %82 = tpu.matmul %79, %81, %cst_59 {dimension_numbers = #tpu.dot_dimension_numbers<[1], [0], [0], [1], [0, 0, 1, 1], [], []>} : vector<8x256xbf16>, vector<256x32xbf16>, vector<8x32xf32> -> vector<8x32xf32>
      %c1_60 = arith.constant 1 : index
      %c0_61 = arith.constant 0 : index
      %c0_62 = arith.constant 0 : index
      %83 = vector.load %arg14[%c1_60, %c0_61, %c0_62] : memref<2x1x32xf32, #tpu.memory_space<vmem>>, vector<1x1x32xf32>
      %84 = vector.shape_cast %83 : vector<1x1x32xf32> to vector<1x32xf32>
      %85 = vector.broadcast %84 : vector<1x32xf32> to vector<8x32xf32>
      %86 = arith.addf %82, %85 : vector<8x32xf32>
      %c1_i32 = arith.constant 1 : i32
      %87 = vector.broadcast %c1_i32 : i32 to vector<8x1xi32>
      %88 = arith.cmpi eq, %16, %87 : vector<8x1xi32>
      %89 = vector.shape_cast %88 : vector<8x1xi1> to vector<8x1xi1>
      %90 = vector.broadcast %89 : vector<8x1xi1> to vector<8x32xi1>
      %91 = arith.select %90, %86, %59 : vector<8x32xi1>, vector<8x32xf32>
      %c0_63 = arith.constant 0 : index
      %c0_64 = arith.constant 0 : index
      %92 = vector.load %arg16[%c0_63, %c0_64] : memref<8x32xf32, #tpu.memory_space<vmem>>, vector<8x32xf32>
      tpu.vector_store %arg16[%c0_63, %c0_64], %91 {strides = array<i32>} : memref<8x32xf32, #tpu.memory_space<vmem>>, vector<8x32xf32>,
    } else {
    }
    %c2_i32 = arith.constant 2 : i32
    %9 = arith.cmpi eq, %arg1, %c2_i32 : i32
    %10 = arith.extui %9 : i1 to i32
    %c0_i32_3 = arith.constant 0 : i32
    %11 = arith.cmpi ne, %10, %c0_i32_3 : i32
    scf.if %11 {
      %c0 = arith.constant 0 : index
      %c0_4 = arith.constant 0 : index
      %12 = vector.load %arg16[%c0, %c0_4] : memref<8x32xf32, #tpu.memory_space<vmem>>, vector<8x32xf32>
      %cst = arith.constant 0.000000e+00 : f32
      %13 = vector.broadcast %cst : f32 to vector<8x32xf32>
      %14 = arith.maximumf %12, %13 : vector<8x32xf32>
      %c0_5 = arith.constant 0 : index
      %c0_6 = arith.constant 0 : index
      %15 = vector.load %arg15[%c0_5, %c0_6] : memref<8x32xf32, #tpu.memory_space<vmem>>, vector<8x32xf32>
      tpu.vector_store %arg15[%c0_5, %c0_6], %14 {strides = array<i32>} : memref<8x32xf32, #tpu.memory_space<vmem>>, vector<8x32xf32>,
    } else {
    }
    return
  }
  func.func @transform_0(%arg0: i32, %arg1: i32, %arg2: memref<1x3xi32, #tpu.memory_space<smem>>) -> (i32, i32, i32) {
    %c0_i32 = arith.constant 0 : i32
    %c0_i32_0 = arith.constant 0 : i32
    return %arg1, %arg0, %c0_i32 : i32, i32, i32
  }
  func.func @transform_1(%arg0: i32, %arg1: i32, %arg2: memref<1x3xi32, #tpu.memory_space<smem>>) -> (i32, i32, i32) {
    %c0_i32 = arith.constant 0 : i32
    %c0_i32_0 = arith.constant 0 : i32
    return %arg1, %arg0, %c0_i32 : i32, i32, i32
  }
  func.func @transform_2(%arg0: i32, %arg1: i32, %arg2: memref<1x3xi32, #tpu.memory_space<smem>>) -> (i32, i32) {
    %c0_i32 = arith.constant 0 : i32
    %c0_i32_0 = arith.constant 0 : i32
    return %arg0, %c0_i32 : i32, i32
  }
  func.func @transform_3(%arg0: i32, %arg1: i32, %arg2: memref<1x3xi32, #tpu.memory_space<smem>>) -> (i32, i32) {
    %c0_i32 = arith.constant 0 : i32
    %c0_i32_0 = arith.constant 0 : i32
    %c0_i32_1 = arith.constant 0 : i32
    return %c0_i32, %c0_i32_0 : i32, i32
  }
  func.func @transform_4(%arg0: i32, %arg1: i32, %arg2: memref<1x3xi32, #tpu.memory_space<smem>>) -> (i32, i32) {
    %c0_i32 = arith.constant 0 : i32
    %c0_i32_0 = arith.constant 0 : i32
    %c0_i32_1 = arith.constant 0 : i32
    return %c0_i32, %c0_i32_0 : i32, i32
  }
  func.func @transform_5(%arg0: i32, %arg1: i32, %arg2: memref<1x3xi32, #tpu.memory_space<smem>>) -> (i32, i32) {
    %c0_i32 = arith.constant 0 : i32
    %c0_i32_0 = arith.constant 0 : i32
    %c0_i32_1 = arith.constant 0 : i32
    return %c0_i32, %c0_i32_0 : i32, i32
  }
  func.func @transform_6(%arg0: i32, %arg1: i32, %arg2: memref<1x3xi32, #tpu.memory_space<smem>>) -> (i32, i32, i32) {
    %c0_i32 = arith.constant 0 : i32
    %c0_i32_0 = arith.constant 0 : i32
    %c0_i32_1 = arith.constant 0 : i32
    %c0_i32_2 = arith.constant 0 : i32
    return %c0_i32, %c0_i32_0, %c0_i32_1 : i32, i32, i32
  }
  func.func @transform_7(%arg0: i32, %arg1: i32, %arg2: memref<1x3xi32, #tpu.memory_space<smem>>) -> (i32, i32, i32) {
    %c0_i32 = arith.constant 0 : i32
    %c0_i32_0 = arith.constant 0 : i32
    %c0_i32_1 = arith.constant 0 : i32
    %c0_i32_2 = arith.constant 0 : i32
    return %c0_i32, %c0_i32_0, %c0_i32_1 : i32, i32, i32
  }
  func.func @transform_8(%arg0: i32, %arg1: i32, %arg2: memref<1x3xi32, #tpu.memory_space<smem>>) -> (i32, i32, i32) {
    %c0_i32 = arith.constant 0 : i32
    %c0_i32_0 = arith.constant 0 : i32
    %c0_i32_1 = arith.constant 0 : i32
    %c0_i32_2 = arith.constant 0 : i32
    return %c0_i32, %c0_i32_0, %c0_i32_1 : i32, i32, i32
  }
  func.func @transform_9(%arg0: i32, %arg1: i32, %arg2: memref<1x3xi32, #tpu.memory_space<smem>>) -> (i32, i32, i32) {
    %c0_i32 = arith.constant 0 : i32
    %c0_i32_0 = arith.constant 0 : i32
    %c0_i32_1 = arith.constant 0 : i32
    %c0_i32_2 = arith.constant 0 : i32
    return %c0_i32, %c0_i32_0, %c0_i32_1 : i32, i32, i32
  }
  func.func @transform_10(%arg0: i32, %arg1: i32, %arg2: memref<1x3xi32, #tpu.memory_space<smem>>) -> (i32, i32, i32) {
    %c0_i32 = arith.constant 0 : i32
    %c0_i32_0 = arith.constant 0 : i32
    %c0_i32_1 = arith.constant 0 : i32
    %c0_i32_2 = arith.constant 0 : i32
    return %c0_i32, %c0_i32_0, %c0_i32_1 : i32, i32, i32
  }
  func.func @transform_11(%arg0: i32, %arg1: i32, %arg2: memref<1x3xi32, #tpu.memory_space<smem>>) -> (i32, i32, i32) {
    %c0_i32 = arith.constant 0 : i32
    %c0_i32_0 = arith.constant 0 : i32
    %c0_i32_1 = arith.constant 0 : i32
    %c0_i32_2 = arith.constant 0 : i32
    return %c0_i32, %c0_i32_0, %c0_i32_1 : i32, i32, i32
  }
  func.func @transform_12(%arg0: i32, %arg1: i32, %arg2: memref<1x3xi32, #tpu.memory_space<smem>>) -> (i32, i32) {
    %c0_i32 = arith.constant 0 : i32
    %c0_i32_0 = arith.constant 0 : i32
    return %arg0, %c0_i32 : i32, i32
  }
}

</mosaic_0001>

<bundles_post_ra>
// kernel: cascade_forward.1
= control target key start
LH: loop header
LB: loop body
LE: loop exit
PB: predicated region body
PF: predicated region fallthrough
CT: control target
= control target key end

     0   :  { %s3393_s0 = inlined_call_operand.vmem [shape: s32[1,3], index: 0, kind: input, shape index: {}]   ;;  %s3394_s1 = inlined_call_operand.vmem [shape: s32[3,8,1], index: 1, kind: input, shape index: {}]   ;;  %s3395_s2 = inlined_call_operand.vmem [shape: bf16[3,8,16], index: 2, kind: input, shape index: {}]   ;;  %s3396_s3 = inlined_call_operand.vmem [shape: f32[8,32], index: 3, kind: input, shape index: {}]   ;;  %s3397_s4 = inlined_call_operand.vmem [shape: bf16[32,512], index: 4, kind: input, shape index: {}]   ;;  %s3398_s5 = inlined_call_operand.vmem [shape: bf16[16,512], index: 5, kind: input, shape index: {}]   ;;  %s3399_s6 = inlined_call_operand.vmem [shape: f32[1,512], index: 6, kind: input, shape index: {}]   ;;  %s3400_s7 = inlined_call_operand.hbm [shape: bf16[2,256,256], index: 7, kind: input, shape index: {}]   ;;  %s3401_s8 = inlined_call_operand.vmem [shape: f32[2,1,256], index: 8, kind: input, shape index: {}]   ;;  %s3402_s9 = inlined_call_operand.hbm [shape: bf16[2,256,256], index: 9, kind: input, shape index: {}]   ;;  %s3403_s10 = inlined_call_operand.vmem [shape: f32[2,1,256], index: 10, kind: input, shape index: {}]   ;;  %s3404_s11 = inlined_call_operand.vmem [shape: bf16[2,256,32], index: 11, kind: input, shape index: {}]   ;;  %s3405_s12 = inlined_call_operand.vmem [shape: f32[2,1,32], index: 12, kind: input, shape index: {}]   ;;  %s3406_s13 = inlined_call_operand.hbm [shape: f32[8,32], index: 13, kind: output, shape index: {}]  }
   0x1   :  { %s18_s27 = sshll.u32 %s3393_s0, 4  ;;  %s19_s27 = int_to_ptr.vmem [resolvable:$true] %s18_s27 }
   0x2   :  { %s2870_s28 = scalar_lea.vmem %s19_s27, 16  ;;  %p2875_p1 = scmp.lt.s32.totalorder %s19_s27, %s19_s27 }
   0x3   :  { %p2871_p0 = scmp.ne.s32.totalorder %s19_s27, %s2870_s28  ;;  %p2876_p2 = scmp.lt.s32.totalorder %s2870_s28, %s2870_s28 }
   0x5   :  { %p2877_p3 = por %p2876_p2, %p2875_p1 }
   0x7   :  { %p2878_p4 = pnand %p2877_p3, %p2871_p0 }
   0x9   :  { %2881 = shalt.err (!%p2878_p4)  }
   0xa   :  { %s2996_s29 = smov [#allocation4]  }
   0xb   :  { %21 = dma.vmem_to_smem %s19_s27, 16, %s2996_s29, [#allocation3] }
   0xc   :  { %2970 = dma.done.wait [#allocation3], 16 }
   0xd   :  { %2971 = vsyncadd [#allocation3], 4294967280 }
   0xe   :  { %23 = sfence }
   0xf   :  { %24 = vsyncpa [#allocation6], 0 }
  0x10   :  { %25 = vsyncpa [#allocation9], 0 }
  0x11   :  { %26 = vsyncpa [#allocation7], 0  ;;  %s3076_s30 = smov 0   ;;  %s3078_s14 = smov 0  }
  0x12   :  { %s3080_s0 = smov 0  }
  0x13 LB: > { %s2294_s15 = sadd.s32 4294967295, %s2994_s0   ;;  %s41_s16 = sadd.s32 1, %s2990_s14  ;;  %s2994_s0 = sphi %s3080_s0, %s32_s0   ;;  %s2990_s14 = sphi %s3078_s14, %s3412_s14   ;;  %s2986_s30 = sphi %s3076_s30, %s3411_s30  }
  0x14   : > { %p42_p5 = scmp.ge.s32.totalorder %s41_s16, 3  ;;  %p2295_p6 = scmp.ge.s32.totalorder %s2994_s0, 1 }
  0x15   : > { %p346_p7 = scmp.lt.s32.totalorder %s2994_s0, 4  ;;  %p3103_p9 = scmp.eq.s32.totalorder %s2294_s15, 0 }
  0x16   : > { %s3414_s16 = smov (%p42_p5, %s41_s16), 0  ;;  %s2997_s19 = smov [#allocation5]  }
  0x17   : > { %p3097_p8 = pnand %p2295_p6, %p346_p7  ;;  %s374_s20 = sshll.u32 %s2997_s19, 4  ;;  %s375_s20 = int_to_ptr.vmem [resolvable:$true] %s374_s20 }
  0x18   : > { %s2998_s22 = smov [#allocation8]   ;;  %s2893_s24 = scalar_lea.vmem %s375_s20, 8192 }
  0x19   : > { %p2582_p10 = pneg %p3097_p8  ;;  %s390_s23 = sshll.u32 %s2998_s22, 4  ;;  %s391_s23 = int_to_ptr.vmem [resolvable:$true] %s390_s23 }
  0x1a   : > { %p2894_p13 = scmp.ne.s32.totalorder %s375_s20, %s2893_s24  ;;  %p2901_p2 = scmp.lt.s32.totalorder %s375_s20, %s375_s20 }
  0x1b   : > { %p3111_p11 = pnand %p3103_p9, %p2582_p10  ;;  %p2902_p3 = scmp.lt.s32.totalorder %s2893_s24, %s2893_s24 }
  0x1d   : > { %p2884_p12 = pneg %p3111_p11  ;;  %p2903_p4 = por %p2902_p3, %p2901_p2 }
  0x1f   : > { %p2896_p0 = pnand %p2894_p13, %p2884_p12 }
  0x21   : > { %p2897_p1 = pneg %p2896_p0 }
  0x23   : > { %p2904_p5 = pnand %p2903_p4, %p2897_p1 }
  0x25   : > { %2907 = shalt.err (!%p2904_p5)
}
  0x26   : > { %s2999_s25 = smov 128   ;;  %s3000_s26 = smov 8  }
  0x27   : > { %2585 = dma.hbm_to_vmem [thread:$0]  (!%p3111_p11), %s3400_s7, 8192, %s375_s20, [#allocation6], %s2999_s25, %s2999_s25, %s3000_s26  }
  0x28   : > { %s2919_s29 = scalar_lea.vmem %s391_s23, 8192  ;;  %p2927_p13 = scmp.lt.s32.totalorder %s391_s23, %s391_s23 }
  0x29   : > { %p2920_p6 = scmp.ne.s32.totalorder %s391_s23, %s2919_s29  ;;  %p2928_p0 = scmp.lt.s32.totalorder %s2919_s29, %s2919_s29 }
  0x2b   : > { %p2922_p7 = pnand %p2920_p6, %p2884_p12  ;;  %p2929_p2 = por %p2928_p0, %p2927_p13 }
  0x2d   : > { %p2923_p10 = pneg %p2922_p7 }
  0x2f   : > { %p2930_p1 = pnand %p2929_p2, %p2923_p10 }
  0x31   : > { %2933 = shalt.err (!%p2930_p1)
}
  0x32   : > { %2588 = dma.hbm_to_vmem [thread:$0]  (!%p3111_p11), %s3402_s9, 8192, %s391_s23, [#allocation9], %s2999_s25, %s2999_s25, %s3000_s26  }
  0x33   : > { %435 = sbr.rel (%p3097_p8) target bundleno = 1198 (0x4ae), region = 68 }
  0x38   : > { %2973 = dma.done.wait (%p3103_p9), [#allocation6], 8192  }
  0x39   : > { %2975 = vsyncadd (%p3103_p9), [#allocation6], 4294959104 }
  0x3a   : > { %2977 = dma.done.wait (%p3103_p9), [#allocation9], 8192  }
  0x3b   : > { %2979 = vsyncadd (%p3103_p9), [#allocation9], 4294959104  ;;  %p489_p12 = scmp.lt.s32.totalorder %s2986_s30, 2  ;;  %p2305_p8 = scmp.ne.s32.totalorder %s2986_s30, 0 }
  0x3d   : > { %s490_s20 = scalar_select %p489_p12, %s2986_s30, 2 }
  0x3e   : > { %511 = sbr.rel (%p2305_p8) target bundleno = 69 (0x45), region = 80 }
  0x3f   : > { %s2303_s21 = sshll.u32 %s490_s20, 3  ;;  %s2304_s23 = sshll.u32 %s490_s20, 2 }
  0x40   : > { %s3148_s25 = scalar_lea.vmem %s3394_s1, %s2303_s21  ;;  %s502_s28 = scalar_lea.vmem %s3395_s2, %s2304_s23 }
  0x43   : > { %v512_v0 = vld [vmem:[%s3396_s3] sm:$0xff]  ;;  %vm513_vm0 = vcmask 261120  }
  0x44   : > { %514 = vst.msk [vmem:[#allocation2] sm:$0xff] %vm513_vm0, %v512_v0 }
  0x45 PF: > { %s515_s19 = sshra.s32 %s2986_s30, 7  ;;  %s520_s22 = sand.u32 127, %s2986_s30 }
  0x46   : > { %s2306_s20 = sshll.u32 %s515_s19, 7 }
  0x47   : > { %s521_s21 = sadd.s32 %s2306_s20, %s520_s22 }
  0x48   : > { %s522_s17 = sld [smem:[#allocation4 + %s521_s21]] }
  0x4e   : > { %p2307_p9 = scmp.le.s32.totalorder %s522_s17, 0 }
  0x50   : > { %526 = sbr.rel (%p2307_p9) target bundleno = 1172 (0x494), region = 84 }
  0x55   : > { %v2627_v1 = vld [vmem:[%s3398_s5 + $0x4] ss:$16 sps:$4 sm:$0xff]   ;;  %v2629_v2 = vld [vmem:[%s3398_s5] ss:$16 sps:$4 sm:$0xff]   ;;  %v3001_v3 = vmov 0   ;;  %vm563_vm1 = vcmask 130048  }
  0x56   : > { %599 = vmatprep.mubr.bf16.mxu0 %v3001_v3  ;;  %640 = vmatprep.mubr.bf16.mxu1 %v3001_v3  ;;  %v3167_v4 = vld [vmem:[%s502_s28] sm:$0xf]  ;;  %v2632_v5 = vld [vmem:[%s3397_s4 + $0x24] ss:$16 sps:$4 sm:$0xff]   ;;  %vm689_vm2 = vcmask 261120  }
  0x57   : > { %581 = vmatprep.subr.bf16.mxu0 %v2627_v1  ;;  %2626 = vset.pattern.permute.xlu0 %v3001_v3  ;;  %v2630_v6 = vld [vmem:[%s3397_s4 + $0x20] ss:$16 sps:$4 sm:$0xff]   ;;  %v2635_v7 = vld [vmem:[%s3397_s4 + $0x4] ss:$16 sps:$4 sm:$0xff]   ;;  %v2684_v43 = vld [vmem:[%s3398_s5 + $0xc] ss:$16 sps:$4 sm:$0xff]  }
  0x58   : > { %582 = vmatpush1.bf16.msra.mxu0 %v2629_v2  ;;  %v2633_v8 = vld [vmem:[%s3397_s4] ss:$16 sps:$4 sm:$0xff]   ;;  %v2638_v10 = vld [vmem:[#allocation5 + $0x74] ss:$8 sps:$4 sm:$0xff]   ;;  %v2641_v13 = vld [vmem:[#allocation5 + $0x64] ss:$8 sps:$4 sm:$0xff]   ;;  %622 = vmatprep.subr.bf16.mxu1 %v2684_v43 }
  0x59   : > { %705 = vmatprep.subr.bf16.mxu0 %v2632_v5  ;;  %v527_v9 = vld [vmem:[#allocation2] sm:$0xff]  ;;  %v2639_v14 = vld [vmem:[#allocation5 + $0x60] ss:$8 sps:$4 sm:$0xff]   ;;  %v2647_v17 = vld [vmem:[#allocation5 + $0x44] ss:$8 sps:$4 sm:$0xff]  }
  0x5a   : > { %v3185_v11 = vpack.c.bf16 %v527_v9, %v527_v9  ;;  %v2636_v12 = vld [vmem:[#allocation5 + $0x70] ss:$8 sps:$4 sm:$0xff]   ;;  %v2644_v15 = vld [vmem:[#allocation5 + $0x54] ss:$8 sps:$4 sm:$0xff]   ;;  %v2645_v18 = vld [vmem:[#allocation5 + $0x40] ss:$8 sps:$4 sm:$0xff]  }
  0x5b   : > { %2312 = vmatmul.mubr.msk.bf16.vlgmr.msra.gmra.mxu0 %vm563_vm1, %v3167_v4  ;;  %v2642_v16 = vld [vmem:[#allocation5 + $0x50] ss:$8 sps:$4 sm:$0xff]   ;;  %v2650_v19 = vld [vmem:[#allocation5 + $0x34] ss:$8 sps:$4 sm:$0xff]   ;;  %v2653_v21 = vld [vmem:[#allocation5 + $0x24] ss:$8 sps:$4 sm:$0xff]  }
  0x5c   : > { %706 = vmatpush1.bf16.msra.mxu0 %v2630_v6  ;;  %725 = vmatprep.mubr.bf16.mxu0 %v3001_v3  ;;  %v2648_v20 = vld [vmem:[#allocation5 + $0x30] ss:$8 sps:$4 sm:$0xff]   ;;  %v2651_v22 = vld [vmem:[#allocation5 + $0x20] ss:$8 sps:$4 sm:$0xff]   ;;  %v2656_v23 = vld [vmem:[#allocation5 + $0x14] ss:$8 sps:$4 sm:$0xff]  }
  0x5d   : > { %707 = vmatprep.subr.bf16.mxu0 %v2635_v7  ;;  %v2654_v24 = vld [vmem:[#allocation5 + $0x10] ss:$8 sps:$4 sm:$0xff]   ;;  %v2659_v25 = vld [vmem:[#allocation5 + $0x4] ss:$8 sps:$4 sm:$0xff]   ;;  %v2657_v26 = vld [vmem:[#allocation5] ss:$8 sps:$4 sm:$0xff]  }
  0x5e   : > { %v2662_v27 = vld [vmem:[#allocation5 + $0xf4] ss:$8 sps:$4 sm:$0xff]   ;;  %v2660_v28 = vld [vmem:[#allocation5 + $0xf0] ss:$8 sps:$4 sm:$0xff]   ;;  %v2665_v29 = vld [vmem:[#allocation5 + $0xe4] ss:$8 sps:$4 sm:$0xff]  }
  0x5f   : > { %v2663_v30 = vld [vmem:[#allocation5 + $0xe0] ss:$8 sps:$4 sm:$0xff]   ;;  %v2668_v31 = vld [vmem:[#allocation5 + $0xd4] ss:$8 sps:$4 sm:$0xff]   ;;  %v2666_v32 = vld [vmem:[#allocation5 + $0xd0] ss:$8 sps:$4 sm:$0xff]  }
  0x60   : > { %708 = vmatpush1.bf16.msra.mxu0 %v2633_v8  ;;  %v2671_v33 = vld [vmem:[#allocation5 + $0xc4] ss:$8 sps:$4 sm:$0xff]   ;;  %v2669_v34 = vld [vmem:[#allocation5 + $0xc0] ss:$8 sps:$4 sm:$0xff]   ;;  %v2674_v35 = vld [vmem:[#allocation5 + $0xb4] ss:$8 sps:$4 sm:$0xff]  }
  0x61   : > { %1011 = vmatprep.subr.bf16.mxu0 %v2638_v10  ;;  %v2672_v36 = vld [vmem:[#allocation5 + $0xb0] ss:$8 sps:$4 sm:$0xff]   ;;  %v2677_v37 = vld [vmem:[#allocation5 + $0xa4] ss:$8 sps:$4 sm:$0xff]   ;;  %v2675_v38 = vld [vmem:[#allocation5 + $0xa0] ss:$8 sps:$4 sm:$0xff]  }
  0x62   : > { %v2680_v39 = vld [vmem:[#allocation5 + $0x94] ss:$8 sps:$4 sm:$0xff]   ;;  %v2678_v40 = vld [vmem:[#allocation5 + $0x90] ss:$8 sps:$4 sm:$0xff]   ;;  %v2683_v41 = vld [vmem:[#allocation5 + $0x84] ss:$8 sps:$4 sm:$0xff]  }
  0x63   : > { %2322 = vmatmul.mubr.msk.bf16.vlgmr.msra.gmra.mxu0 %vm689_vm2, %v3185_v11  ;;  %v2681_v42 = vld [vmem:[#allocation5 + $0x80] ss:$8 sps:$4 sm:$0xff]   ;;  %v2689_v45 = vld [vmem:[%s3397_s4 + $0x2c] ss:$16 sps:$4 sm:$0xff]   ;;  %v2693_v50 = vld [vmem:[#allocation8 + $0x70] ss:$8 sps:$4 sm:$0xff]  }
  0x64   : > { %1012 = vmatpush1.bf16.msra.mxu0 %v2636_v12  ;;  %v2686_v44 = vld [vmem:[%s3398_s5 + $0x8] ss:$16 sps:$4 sm:$0xff]   ;;  %v2692_v47 = vld [vmem:[%s3397_s4 + $0xc] ss:$16 sps:$4 sm:$0xff]  }
  0x65   : > { %1013 = vmatprep.subr.bf16.mxu0 %v2641_v13  ;;  %623 = vmatpush1.bf16.msra.mxu1 %v2686_v44  ;;  %v2687_v46 = vld [vmem:[%s3397_s4 + $0x28] ss:$16 sps:$4 sm:$0xff]   ;;  %v2695_v49 = vld [vmem:[#allocation8 + $0x74] ss:$8 sps:$4 sm:$0xff]   ;;  %v2698_v51 = vld [vmem:[#allocation8 + $0x64] ss:$8 sps:$4 sm:$0xff]  }
  0x66   : > { %746 = vmatprep.subr.bf16.mxu1 %v2689_v45  ;;  %v2690_v48 = vld [vmem:[%s3397_s4 + $0x8] ss:$16 sps:$4 sm:$0xff]   ;;  %v2701_v53 = vld [vmem:[#allocation8 + $0x54] ss:$8 sps:$4 sm:$0xff]   ;;  %v2704_v55 = vld [vmem:[#allocation8 + $0x44] ss:$8 sps:$4 sm:$0xff]  }
  0x67   : > { %v2696_v52 = vld [vmem:[#allocation8 + $0x60] ss:$8 sps:$4 sm:$0xff]   ;;  %v2699_v54 = vld [vmem:[#allocation8 + $0x50] ss:$8 sps:$4 sm:$0xff]   ;;  %v2707_v57 = vld [vmem:[#allocation8 + $0x34] ss:$8 sps:$4 sm:$0xff]  }
  0x68   : > { %1014 = vmatpush1.bf16.msra.mxu0 %v2639_v14  ;;  %2313 = vmatmul.mubr.msk.bf16.vlgmr.msra.gmra.mxu1 %vm563_vm1, %v3167_v4  ;;  %v2702_v56 = vld [vmem:[#allocation8 + $0x40] ss:$8 sps:$4 sm:$0xff]   ;;  %v2705_v58 = vld [vmem:[#allocation8 + $0x30] ss:$8 sps:$4 sm:$0xff]   ;;  %v2710_v59 = vld [vmem:[#allocation8 + $0x24] ss:$8 sps:$4 sm:$0xff]  }
  0x69   : > { %1015 = vmatprep.subr.bf16.mxu0 %v2644_v15  ;;  %747 = vmatpush1.bf16.msra.mxu1 %v2687_v46  ;;  %v2708_v60 = vld [vmem:[#allocation8 + $0x20] ss:$8 sps:$4 sm:$0xff]   ;;  %v2713_v61 = vld [vmem:[#allocation8 + $0x14] ss:$8 sps:$4 sm:$0xff]   ;;  %v2711_v62 = vld [vmem:[#allocation8 + $0x10] ss:$8 sps:$4 sm:$0xff]  }
  0x6a   : > { %766 = vmatprep.mubr.bf16.mxu1 %v3001_v3  ;;  %748 = vmatprep.subr.bf16.mxu1 %v2692_v47  ;;  %v2716_v63 = vld [vmem:[#allocation8 + $0x4] ss:$8 sps:$4 sm:$0xff]   ;;  %v2714_v0 = vld [vmem:[#allocation8] ss:$8 sps:$4 sm:$0xff]   ;;  %v2719_v1 = vld [vmem:[#allocation8 + $0xf4] ss:$8 sps:$4 sm:$0xff]  }
  0x6b   : > { %v2717_v2 = vld [vmem:[#allocation8 + $0xf0] ss:$8 sps:$4 sm:$0xff]   ;;  %v2722_v4 = vld [vmem:[#allocation8 + $0xe4] ss:$8 sps:$4 sm:$0xff]   ;;  %v2720_v5 = vld [vmem:[#allocation8 + $0xe0] ss:$8 sps:$4 sm:$0xff]  }
  0x6c   : > { %1016 = vmatpush1.bf16.msra.mxu0 %v2642_v16  ;;  %v2725_v6 = vld [vmem:[#allocation8 + $0xd4] ss:$8 sps:$4 sm:$0xff]   ;;  %v2723_v7 = vld [vmem:[#allocation8 + $0xd0] ss:$8 sps:$4 sm:$0xff]   ;;  %v2728_v8 = vld [vmem:[#allocation8 + $0xc4] ss:$8 sps:$4 sm:$0xff]   ;;  %v777_v16 = vlaneseq }
  0x6d   : > { %1017 = vmatprep.subr.bf16.mxu0 %v2647_v17  ;;  %749 = vmatpush1.bf16.msra.mxu1 %v2690_v48  ;;  %v2726_v9 = vld [vmem:[#allocation8 + $0xc0] ss:$8 sps:$4 sm:$0xff]   ;;  %v2731_v10 = vld [vmem:[#allocation8 + $0xb4] ss:$8 sps:$4 sm:$0xff]   ;;  %v2734_v12 = vld [vmem:[#allocation8 + $0xa4] ss:$8 sps:$4 sm:$0xff]  }
  0x6e   : > { %1258 = vmatprep.subr.bf16.mxu1 %v2695_v49  ;;  %v2732_v13 = vld [vmem:[#allocation8 + $0xa0] ss:$8 sps:$4 sm:$0xff]   ;;  %v2737_v14 = vld [vmem:[#allocation8 + $0x94] ss:$8 sps:$4 sm:$0xff]   ;;  %v2735_v15 = vld [vmem:[#allocation8 + $0x90] ss:$8 sps:$4 sm:$0xff]  }
  0x6f   : > { %v3212_v17 = vshrl.u32 %v777_v16, 7 }
  0x70   : > { %1018 = vmatpush1.bf16.msra.mxu0 %v2645_v18  ;;  %2323 = vmatmul.mubr.msk.bf16.vlgmr.msra.gmra.mxu1 %vm689_vm2, %v3185_v11  ;;  %v2729_v11 = vld [vmem:[#allocation8 + $0xb0] ss:$8 sps:$4 sm:$0xff]  }
  0x71   : > { %1019 = vmatprep.subr.bf16.mxu0 %v2650_v19  ;;  %1259 = vmatpush1.bf16.msra.mxu1 %v2693_v50 }
  0x72   : > { %1260 = vmatprep.subr.bf16.mxu1 %v2698_v51 }
  0x74   : > { %1020 = vmatpush1.bf16.msra.mxu0 %v2648_v20  ;;  %v3215_v20 = vsub.s32 0, %v3212_v17 }
  0x75   : > { %1021 = vmatprep.subr.bf16.mxu0 %v2653_v21  ;;  %1261 = vmatpush1.bf16.msra.mxu1 %v2696_v52  ;;  %v2789_v52 = vld [vmem:[%s3404_s11 + $0x78] sm:$0xff]  }
  0x76   : > { %1262 = vmatprep.subr.bf16.mxu1 %v2701_v53  ;;  %v2790_v53 = vld [vmem:[%s3404_s11 + $0x38] sm:$0xff]  }
  0x78   : > { %1022 = vmatpush1.bf16.msra.mxu0 %v2651_v22  ;;  %v3220_v22 = vld [vmem:[%s3399_s6] sm:$0xf] }
  0x79   : > { %1023 = vmatprep.subr.bf16.mxu0 %v2656_v23  ;;  %1263 = vmatpush1.bf16.msra.mxu1 %v2699_v54  ;;  %v3223_v23 = vsub.s32 1, %v3212_v17  ;;  %v2791_v54 = vld [vmem:[%s3404_s11 + $0x70] sm:$0xff]  }
  0x7a   : > { %1264 = vmatprep.subr.bf16.mxu1 %v2704_v55  ;;  %v2792_v55 = vld [vmem:[%s3404_s11 + $0x30] sm:$0xff]  }
  0x7c   : > { %1024 = vmatpush1.bf16.msra.mxu0 %v2654_v24 }
  0x7d   : > { %1025 = vmatprep.subr.bf16.mxu0 %v2659_v25  ;;  %1265 = vmatpush1.bf16.msra.mxu1 %v2702_v56  ;;  %v780_v25 = vrot.slane %v3220_v22, %v3215_v20  ;;  %v2793_v56 = vld [vmem:[%s3404_s11 + $0x68] sm:$0xff]  }
  0x7e   : > { %1266 = vmatprep.subr.bf16.mxu1 %v2707_v57  ;;  %v2794_v57 = vld [vmem:[%s3404_s11 + $0x28] sm:$0xff]  }
  0x80   : > { %1026 = vmatpush1.bf16.msra.mxu0 %v2657_v26 }
  0x81   : > { %1027 = vmatprep.subr.bf16.mxu0 %v2662_v27  ;;  %1267 = vmatpush1.bf16.msra.mxu1 %v2705_v58  ;;  %v2795_v58 = vld [vmem:[%s3404_s11 + $0x60] sm:$0xff]  }
  0x82   : > { %1268 = vmatprep.subr.bf16.mxu1 %v2710_v59  ;;  %v2796_v59 = vld [vmem:[%s3404_s11 + $0x20] sm:$0xff]  }
  0x84   : > { %1028 = vmatpush2.bf16.msra.mxu0 %v2660_v28  ;;  %v784_v28 = vrot.slane %v3220_v22, %v3223_v23 }
  0x85   : > { %1029 = vmatprep.subr.bf16.mxu0 %v2665_v29  ;;  %1269 = vmatpush1.bf16.msra.mxu1 %v2708_v60  ;;  %v2797_v60 = vld [vmem:[%s3404_s11 + $0x58] sm:$0xff]  }
  0x86   : > { %1270 = vmatprep.subr.bf16.mxu1 %v2713_v61  ;;  %v2798_v61 = vld [vmem:[%s3404_s11 + $0x18] sm:$0xff]  }
  0x88   : > { %1030 = vmatpush2.bf16.msra.mxu0 %v2663_v30 }
  0x89   : > { %1031 = vmatprep.subr.bf16.mxu0 %v2668_v31  ;;  %1271 = vmatpush1.bf16.msra.mxu1 %v2711_v62  ;;  %v2799_v62 = vld [vmem:[%s3404_s11 + $0x50] sm:$0xff]  }
  0x8a   : > { %1272 = vmatprep.subr.bf16.mxu1 %v2716_v63  ;;  %v2800_v63 = vld [vmem:[%s3404_s11 + $0x10] sm:$0xff]  }
  0x8c   : > { %1032 = vmatpush2.bf16.msra.mxu0 %v2666_v32 }
  0x8d   : > { %1033 = vmatprep.subr.bf16.mxu0 %v2671_v33  ;;  %1273 = vmatpush1.bf16.msra.mxu1 %v2714_v0  ;;  %v791_v0 = vsub.s32 3, %v3212_v17 }
  0x8e   : > { %1274 = vmatprep.subr.bf16.mxu1 %v2719_v1 }
  0x8f   : > { %v792_v1 = vrot.slane %v3220_v22, %v791_v0 }
  0x90   : > { %1034 = vmatpush2.bf16.msra.mxu0 %v2669_v34 }
  0x91   : > { %1035 = vmatprep.subr.bf16.mxu0 %v2674_v35  ;;  %1275 = vmatpush2.bf16.msra.mxu1 %v2717_v2  ;;  %v839_v2 = vld [vmem:[%s3401_s8] sm:$0x3] }
  0x92   : > { %1276 = vmatprep.subr.bf16.mxu1 %v2722_v4 }
  0x94   : > { %1036 = vmatpush2.bf16.msra.mxu0 %v2672_v36 }
  0x95   : > { %1037 = vmatprep.subr.bf16.mxu0 %v2677_v37  ;;  %1277 = vmatpush2.bf16.msra.mxu1 %v2720_v5  ;;  %v844_v5 = vrot.slane %v839_v2, %v3215_v20 }
  0x96   : > { %1278 = vmatprep.subr.bf16.mxu1 %v2725_v6  ;;  %v848_v6 = vrot.slane %v839_v2, %v3223_v23 }
  0x98   : > { %1038 = vmatpush2.bf16.msra.mxu0 %v2675_v38 }
  0x99   : > { %1039 = vmatprep.subr.bf16.mxu0 %v2680_v39  ;;  %1279 = vmatpush2.bf16.msra.mxu1 %v2723_v7  ;;  %v2740_v39 = vld [vmem:[#allocation8 + $0x84] ss:$8 sps:$4 sm:$0xff]  }
  0x9a   : > { %1280 = vmatprep.subr.bf16.mxu1 %v2728_v8 }
  0x9c   : > { %1040 = vmatpush2.bf16.msra.mxu0 %v2678_v40  ;;  %v2738_v40 = vld [vmem:[#allocation8 + $0x80] ss:$8 sps:$4 sm:$0xff]  }
  0x9d   : > { %1041 = vmatprep.subr.bf16.mxu0 %v2683_v41  ;;  %1281 = vmatpush2.bf16.msra.mxu1 %v2726_v9  ;;  %v2743_v41 = vld [vmem:[#allocation5 + $0x174] ss:$8 sps:$4 sm:$0xff]  }
  0x9e   : > { %1282 = vmatprep.subr.bf16.mxu1 %v2731_v10 }
  0xa0   : > { %1042 = vmatpush2.bf16.msra.mxu0 %v2681_v42 }
  0xa1   : > { %1283 = vmatpush2.bf16.msra.mxu1 %v2729_v11  ;;  %2526 = vmatprep.subr.bf16.mxu0 %v2789_v52  ;;  %v2783_v52 = vld [vmem:[#allocation5 + $0x190] ss:$8 sps:$4 sm:$0xff]  }
  0xa2   : > { %1284 = vmatprep.subr.bf16.mxu1 %v2734_v12 }
  0xa5   : > { %1285 = vmatpush2.bf16.msra.mxu1 %v2732_v13 }
  0xa6   : > { %1286 = vmatprep.subr.bf16.mxu1 %v2737_v14  ;;  %v2741_v14 = vld [vmem:[#allocation5 + $0x170] ss:$8 sps:$4 sm:$0xff]  }
  0xa9   : > { %1287 = vmatpush2.bf16.msra.mxu1 %v2735_v15 }
  0xaa   : > { %1288 = vmatprep.subr.bf16.mxu1 %v2740_v39  ;;  %v2768_v39 = vld [vmem:[#allocation5 + $0x1e0] ss:$8 sps:$4 sm:$0xff]  }
  0xad   : > { %1289 = vmatpush2.bf16.msra.mxu1 %v2738_v40  ;;  %v2773_v40 = vld [vmem:[#allocation5 + $0x1d4] ss:$8 sps:$4 sm:$0xff]  }
  0xae   : > { %1693 = vmatprep.subr.bf16.mxu1 %v2743_v41  ;;  %v2771_v41 = vld [vmem:[#allocation5 + $0x1d0] ss:$8 sps:$4 sm:$0xff]  }
 0x11b   : > { %v601_v18 = vpop.f32.mrf.mxu0 }
 0x11d   : > { %v603_v19 = vpop.f32.mrf.mxu0 }
 0x11f   : > { %v605_v21 = vpop.f32.mrf.mxu0 }
 0x120   : > { %v2744_v21 = vld [vmem:[#allocation5 + $0x160] ss:$8 sps:$4 sm:$0xff]  }
 0x121   : > { %v606_v24 = vpop.f32.mrf.mxu0 }
 0x122   : > { %v2749_v24 = vld [vmem:[#allocation5 + $0x154] ss:$8 sps:$4 sm:$0xff]  }
 0x123   : > { %v727_v26 = vpop.f32.mrf.mxu0 }
 0x124   : > { %v728_v27 = vadd.f32 %v727_v26, %v601_v18  ;;  %v2752_v26 = vld [vmem:[#allocation5 + $0x144] ss:$8 sps:$4 sm:$0xff]  }
 0x125   : > { %v729_v29 = vpop.f32.mrf.mxu0 }
 0x126   : > { %v797_v30 = vadd.f32 %v780_v25, %v728_v27  ;;  %v730_v31 = vadd.f32 %v729_v29, %v603_v19  ;;  %v2746_v19 = vld [vmem:[#allocation5 + $0x164] ss:$8 sps:$4 sm:$0xff]   ;;  %v2747_v25 = vld [vmem:[#allocation5 + $0x150] ss:$8 sps:$4 sm:$0xff]   ;;  %v2750_v27 = vld [vmem:[#allocation5 + $0x140] ss:$8 sps:$4 sm:$0xff]  }
 0x127   : > { %v731_v32 = vpop.f32.mrf.mxu0  ;;  %v2753_v29 = vld [vmem:[#allocation5 + $0x130] ss:$8 sps:$4 sm:$0xff]  }
 0x128   : > { %v798_v33 = vadd.f32 %v784_v28, %v730_v31  ;;  %v801_v34 = vmax.f32 %v797_v30, 0.0  ;;  %v642_v42 = vpop.f32.mrf.mxu1  ;;  %v2755_v28 = vld [vmem:[#allocation5 + $0x134] ss:$8 sps:$4 sm:$0xff]   ;;  %v2758_v30 = vld [vmem:[#allocation5 + $0x124] ss:$8 sps:$4 sm:$0xff]  }
 0x129   : > { %v732_v35 = vpop.f32.mrf.mxu0  ;;  %v2756_v31 = vld [vmem:[#allocation5 + $0x120] ss:$8 sps:$4 sm:$0xff]   ;;  %v2761_v32 = vld [vmem:[#allocation5 + $0x114] ss:$8 sps:$4 sm:$0xff]  }
 0x12a   : > { %v802_v36 = vmax.f32 %v798_v33, 0.0  ;;  %v805_v38 = vpack.c.bf16 %v801_v34, %v801_v34  ;;  %v644_v43 = vpop.f32.mrf.mxu1  ;;  %v2759_v33 = vld [vmem:[#allocation5 + $0x110] ss:$8 sps:$4 sm:$0xff]   ;;  %v2764_v34 = vld [vmem:[#allocation5 + $0x104] ss:$8 sps:$4 sm:$0xff]  }
 0x12b   : > { %v2762_v35 = vld [vmem:[#allocation5 + $0x100] ss:$8 sps:$4 sm:$0xff]  }
 0x12c   : > { %v806_v37 = vpack.c.bf16 %v802_v36, %v802_v36  ;;  %v646_v44 = vpop.f32.mrf.mxu1  ;;  %v2767_v36 = vld [vmem:[#allocation5 + $0x1f4] ss:$8 sps:$4 sm:$0xff]  }
 0x12d   : > { %v2779_v44 = vld [vmem:[#allocation5 + $0x1b4] ss:$8 sps:$4 sm:$0xff]  }
 0x12e   : > { %1043 = vmatprep.mubr.bf16.mxu0 %v806_v37  ;;  %v647_v45 = vpop.f32.mrf.mxu1  ;;  %v2765_v37 = vld [vmem:[#allocation5 + $0x1f0] ss:$8 sps:$4 sm:$0xff]  }
 0x12f   : > { %1044 = vmatmul.mubr.bf16.vlgmr.msra.gmra.mxu0 %v805_v38  ;;  %v2770_v38 = vld [vmem:[#allocation5 + $0x1e4] ss:$8 sps:$4 sm:$0xff]   ;;  %v2777_v45 = vld [vmem:[#allocation5 + $0x1b0] ss:$8 sps:$4 sm:$0xff]  }
 0x130   : > { %v768_v46 = vpop.f32.mrf.mxu1  ;;  %2527 = vmatpush3.bf16.msra.mxu0 %v2790_v53 }
 0x131   : > { %v3229_v47 = vadd.f32 %v768_v46, %v642_v42  ;;  %2528 = vmatprep.subr.bf16.mxu0 %v2791_v54  ;;  %v2776_v42 = vld [vmem:[#allocation5 + $0x1c4] ss:$8 sps:$4 sm:$0xff]   ;;  %v787_v46 = vsub.s32 2, %v3212_v17 }
 0x132   : > { %v770_v48 = vpop.f32.mrf.mxu1  ;;  %v2788_v54 = vld [vmem:[#allocation5 + $0x184] ss:$8 sps:$4 sm:$0xff]  }
 0x133   : > { %v771_v49 = vadd.f32 %v770_v48, %v644_v43  ;;  %v2774_v43 = vld [vmem:[#allocation5 + $0x1c0] ss:$8 sps:$4 sm:$0xff]   ;;  %v2782_v48 = vld [vmem:[#allocation5 + $0x1a4] ss:$8 sps:$4 sm:$0xff]  }
 0x134   : > { %v772_v50 = vpop.f32.mrf.mxu1  ;;  %2529 = vmatpush3.bf16.msra.mxu0 %v2792_v55  ;;  %v2786_v55 = vld [vmem:[#allocation5 + $0x180] ss:$8 sps:$4 sm:$0xff]  }
 0x135   : > { %2530 = vmatprep.subr.bf16.mxu0 %v2793_v56  ;;  %v800_v4 = vadd.f32 %v792_v1, %v771_v49  ;;  %v2780_v49 = vld [vmem:[#allocation5 + $0x1a0] ss:$8 sps:$4 sm:$0xff]   ;;  %v788_v50 = vrot.slane %v3220_v22, %v787_v46  ;;  %v2847_v46 = vld [vmem:[#allocation8 + $0x190] ss:$8 sps:$4 sm:$0xff]  }
 0x136   : > { %v773_v51 = vpop.f32.mrf.mxu1  ;;  %v2801_v22 = vld [vmem:[%s3404_s11 + $0x48] sm:$0xff]  }
 0x137   : > { %v804_v8 = vmax.f32 %v800_v4, 0.0  ;;  %v2785_v51 = vld [vmem:[#allocation5 + $0x194] ss:$8 sps:$4 sm:$0xff]   ;;  %v799_v53 = vadd.f32 %v788_v50, %v3229_v47  ;;  %v2852_v50 = vld [vmem:[#allocation8 + $0x184] ss:$8 sps:$4 sm:$0xff]  }
 0x138   : > { %2531 = vmatpush3.bf16.msra.mxu0 %v2794_v57  ;;  %v2802_v57 = vld [vmem:[%s3404_s11 + $0x8] sm:$0xff]   ;;  %v2803_v47 = vld [vmem:[%s3404_s11 + $0x40] sm:$0xff]  }
 0x139   : > { %2532 = vmatprep.subr.bf16.mxu0 %v2795_v58  ;;  %v1486_v15 = vpack.c.bf16 %v804_v8, %v804_v8  ;;  %v803_v56 = vmax.f32 %v799_v53, 0.0  ;;  %v2804_v58 = vld [vmem:[%s3404_s11] sm:$0xff]   ;;  %v2850_v53 = vld [vmem:[#allocation8 + $0x180] ss:$8 sps:$4 sm:$0xff]  }
 0x13b   : > { %v1485_v17 = vpack.c.bf16 %v803_v56, %v803_v56 }
 0x13c   : > { %2533 = vmatpush3.bf16.msra.mxu0 %v2796_v59  ;;  %v2807_v59 = vld [vmem:[#allocation8 + $0x174] ss:$8 sps:$4 sm:$0xff]  }
 0x13d   : > { %2534 = vmatprep.subr.bf16.mxu0 %v2797_v60  ;;  %v3290_v60 = vld [vmem:[%s3148_s25] sm:$0xff] }
 0x13e   : > { %vm1478_vm3 = vcmp.eq.s32.totalorder %v3290_v60, 0  ;;  %vm2164_vm4 = vcmp.eq.s32.totalorder %v3290_v60, 1 }
 0x140   : > { %2535 = vmatpush3.bf16.msra.mxu0 %v2798_v61  ;;  %v1479_v61 = vsel %vm1478_vm3, 1, %v3001_v3 }
 0x141   : > { %2536 = vmatprep.subr.bf16.mxu0 %v2799_v62  ;;  %1481 = vperm.xlu0 %2626, %v1479_v61   ;;  %v1086_v62 = vld [vmem:[%s3403_s10] sm:$0x3]  ;;  %v2857_v61 = vld [vmem:[%s3404_s11 + $0xe8] sm:$0xff]  }
 0x142   : > { %v1095_v0 = vrot.slane %v1086_v62, %v3223_v23 }
 0x144   : > { %2537 = vmatpush3.bf16.msra.mxu0 %v2800_v63  ;;  %v1091_v63 = vrot.slane %v1086_v62, %v3215_v20  ;;  %v2858_v62 = vld [vmem:[%s3404_s11 + $0xa8] sm:$0xff]  }
 0x145   : > { %2538 = vmatprep.subr.bf16.mxu0 %v2801_v22 }
 0x148   : > { %2539 = vmatpush3.bf16.msra.mxu0 %v2802_v57  ;;  %v2853_v57 = vld [vmem:[%s3404_s11 + $0xf8] sm:$0xff]  }
 0x149   : > { %2540 = vmatprep.subr.bf16.mxu0 %v2803_v47  ;;  %v2854_v47 = vld [vmem:[%s3404_s11 + $0xb8] sm:$0xff]  }
 0x14c   : > { %2541 = vmatpush3.bf16.msra.mxu0 %v2804_v58  ;;  %v2855_v58 = vld [vmem:[%s3404_s11 + $0xf0] sm:$0xff]  }
 0x14d   : > { %1942 = vmatprep.subr.bf16.mxu0 %v2807_v59  ;;  %v2856_v59 = vld [vmem:[%s3404_s11 + $0xb0] sm:$0xff]  }
 0x1ef   : > { %v1045_v7 = vpop.f32.mrf.mxu0 }
 0x1f0   : > { %v1046_v9 = vadd.f32 %v1045_v7, %v844_v5 }
 0x1f1   : > { %v1047_v10 = vpop.f32.mrf.mxu0 }
 0x1f2   : > { %v1048_v11 = vadd.f32 %v1047_v10, %v848_v6  ;;  %v1052_v16 = vpack.c.bf16 %v1046_v9, %v1046_v9 }
 0x1f3   : > { %v1049_v12 = vpop.f32.mrf.mxu0 }
 0x1f4   : > { %v1053_v13 = vpack.c.bf16 %v1048_v11, %v1048_v11  ;;  %v2805_v11 = vld [vmem:[#allocation8 + $0x170] ss:$8 sps:$4 sm:$0xff]  }
 0x1f5   : > { %v1050_v18 = vpop.f32.mrf.mxu0 }
 0x1f6   : > { %1290 = vmatprep.mubr.bf16.mxu1 %v1053_v13  ;;  %v2810_v13 = vld [vmem:[#allocation8 + $0x164] ss:$8 sps:$4 sm:$0xff]  }
 0x1f7   : > { %1291 = vmatmul.mubr.bf16.vlgmr.msra.gmra.mxu1 %v1052_v16  ;;  %v2811_v16 = vld [vmem:[#allocation8 + $0x150] ss:$8 sps:$4 sm:$0xff]   ;;  %v2816_v18 = vld [vmem:[#allocation8 + $0x144] ss:$8 sps:$4 sm:$0xff]  }
 0x1f8   : > { %1694 = vmatpush1.bf16.msra.mxu1 %v2741_v14  ;;  %1725 = vmatprep.mubr.bf16.mxu1 %v1486_v15  ;;  %v2808_v14 = vld [vmem:[#allocation8 + $0x160] ss:$8 sps:$4 sm:$0xff]   ;;  %v2813_v15 = vld [vmem:[#allocation8 + $0x154] ss:$8 sps:$4 sm:$0xff]  }
 0x1f9   : > { %1695 = vmatprep.subr.bf16.mxu1 %v2746_v19  ;;  %v2814_v19 = vld [vmem:[#allocation8 + $0x140] ss:$8 sps:$4 sm:$0xff]  }
 0x1fc   : > { %1696 = vmatpush1.bf16.msra.mxu1 %v2744_v21  ;;  %v2819_v21 = vld [vmem:[#allocation8 + $0x134] ss:$8 sps:$4 sm:$0xff]  }
 0x1fd   : > { %1697 = vmatprep.subr.bf16.mxu1 %v2749_v24  ;;  %v2817_v24 = vld [vmem:[#allocation8 + $0x130] ss:$8 sps:$4 sm:$0xff]  }
 0x200   : > { %1698 = vmatpush1.bf16.msra.mxu1 %v2747_v25  ;;  %v2822_v25 = vld [vmem:[#allocation8 + $0x124] ss:$8 sps:$4 sm:$0xff]  }
 0x201   : > { %1699 = vmatprep.subr.bf16.mxu1 %v2752_v26  ;;  %v2820_v26 = vld [vmem:[#allocation8 + $0x120] ss:$8 sps:$4 sm:$0xff]  }
 0x204   : > { %1700 = vmatpush1.bf16.msra.mxu1 %v2750_v27  ;;  %v2825_v27 = vld [vmem:[#allocation8 + $0x114] ss:$8 sps:$4 sm:$0xff]  }
 0x205   : > { %1701 = vmatprep.subr.bf16.mxu1 %v2755_v28  ;;  %v2823_v28 = vld [vmem:[#allocation8 + $0x110] ss:$8 sps:$4 sm:$0xff]  }
 0x208   : > { %1702 = vmatpush1.bf16.msra.mxu1 %v2753_v29  ;;  %v2828_v29 = vld [vmem:[#allocation8 + $0x104] ss:$8 sps:$4 sm:$0xff]  }
 0x209   : > { %1703 = vmatprep.subr.bf16.mxu1 %v2758_v30  ;;  %v2826_v30 = vld [vmem:[#allocation8 + $0x100] ss:$8 sps:$4 sm:$0xff]  }
 0x20c   : > { %1704 = vmatpush1.bf16.msra.mxu1 %v2756_v31  ;;  %v2831_v31 = vld [vmem:[#allocation8 + $0x1f4] ss:$8 sps:$4 sm:$0xff]  }
 0x20d   : > { %1705 = vmatprep.subr.bf16.mxu1 %v2761_v32  ;;  %v2829_v32 = vld [vmem:[#allocation8 + $0x1f0] ss:$8 sps:$4 sm:$0xff]  }
 0x210   : > { %1706 = vmatpush1.bf16.msra.mxu1 %v2759_v33  ;;  %v2834_v33 = vld [vmem:[#allocation8 + $0x1e4] ss:$8 sps:$4 sm:$0xff]  }
 0x211   : > { %1707 = vmatprep.subr.bf16.mxu1 %v2764_v34  ;;  %v2832_v34 = vld [vmem:[#allocation8 + $0x1e0] ss:$8 sps:$4 sm:$0xff]  }
 0x214   : > { %1708 = vmatpush1.bf16.msra.mxu1 %v2762_v35  ;;  %v2837_v35 = vld [vmem:[#allocation8 + $0x1d4] ss:$8 sps:$4 sm:$0xff]  }
 0x215   : > { %1709 = vmatprep.subr.bf16.mxu1 %v2767_v36  ;;  %v2835_v36 = vld [vmem:[#allocation8 + $0x1d0] ss:$8 sps:$4 sm:$0xff]  }
 0x218   : > { %1710 = vmatpush2.bf16.msra.mxu1 %v2765_v37  ;;  %v2840_v37 = vld [vmem:[#allocation8 + $0x1c4] ss:$8 sps:$4 sm:$0xff]  }
 0x219   : > { %1711 = vmatprep.subr.bf16.mxu1 %v2770_v38  ;;  %v2838_v38 = vld [vmem:[#allocation8 + $0x1c0] ss:$8 sps:$4 sm:$0xff]  }
 0x21c   : > { %1712 = vmatpush2.bf16.msra.mxu1 %v2768_v39  ;;  %v2843_v39 = vld [vmem:[#allocation8 + $0x1b4] ss:$8 sps:$4 sm:$0xff]  }
 0x21d   : > { %1713 = vmatprep.subr.bf16.mxu1 %v2773_v40  ;;  %v2841_v40 = vld [vmem:[#allocation8 + $0x1b0] ss:$8 sps:$4 sm:$0xff]  }
 0x220   : > { %1714 = vmatpush2.bf16.msra.mxu1 %v2771_v41  ;;  %v2846_v41 = vld [vmem:[#allocation8 + $0x1a4] ss:$8 sps:$4 sm:$0xff]  }
 0x221   : > { %1715 = vmatprep.subr.bf16.mxu1 %v2776_v42  ;;  %v2844_v42 = vld [vmem:[#allocation8 + $0x1a0] ss:$8 sps:$4 sm:$0xff]  }
 0x224   : > { %1716 = vmatpush2.bf16.msra.mxu1 %v2774_v43  ;;  %v2849_v43 = vld [vmem:[#allocation8 + $0x194] ss:$8 sps:$4 sm:$0xff]  }
 0x225   : > { %1717 = vmatprep.subr.bf16.mxu1 %v2779_v44  ;;  %v2405_v44 = vld [vmem:[%s3401_s8 + $0x2] sm:$0x3] }
 0x228   : > { %1718 = vmatpush2.bf16.msra.mxu1 %v2777_v45  ;;  %v1530_v45 = vrot.slane %v2405_v44, %v3223_v23 }
 0x229   : > { %1719 = vmatprep.subr.bf16.mxu1 %v2782_v48  ;;  %v1526_v48 = vrot.slane %v2405_v44, %v3215_v20 }
 0x22c   : > { %1720 = vmatpush2.bf16.msra.mxu1 %v2780_v49 }
 0x22d   : > { %1721 = vmatprep.subr.bf16.mxu1 %v2785_v51 }
 0x230   : > { %1722 = vmatpush2.bf16.msra.mxu1 %v2783_v52 }
 0x231   : > { %1723 = vmatprep.subr.bf16.mxu1 %v2788_v54 }
 0x234   : > { %1724 = vmatpush2.bf16.msra.mxu1 %v2786_v55 }
 0x235   : > { %2548 = vmatprep.subr.bf16.mxu1 %v2853_v57 }
 0x237   : > { %1726 = vmatmul.mubr.bf16.vlgmr.msra.gmra.mxu1 %v1485_v17 }
 0x238   : > { %2549 = vmatpush3.bf16.msra.mxu1 %v2854_v47 }
 0x239   : > { %2550 = vmatprep.subr.bf16.mxu1 %v2855_v58 }
 0x23c   : > { %2551 = vmatpush3.bf16.msra.mxu1 %v2856_v59 }
 0x23d   : > { %2552 = vmatprep.subr.bf16.mxu1 %v2857_v61 }
 0x240   : > { %2553 = vmatpush3.bf16.msra.mxu1 %v2858_v62 }
 0x2b7   : > { %v1292_v1 = vpop.f32.mrf.mxu1 }
 0x2b8   : > { %v1293_v2 = vadd.f32 %v1292_v1, %v1091_v63  ;;  %v2859_v63 = vld [vmem:[%s3404_s11 + $0xe0] sm:$0xff]   ;;  %v2861_v1 = vld [vmem:[%s3404_s11 + $0xd8] sm:$0xff]  }
 0x2b9   : > { %v1294_v4 = vpop.f32.mrf.mxu1  ;;  %2554 = vmatprep.subr.bf16.mxu1 %v2859_v63 }
 0x2ba   : > { %v1295_v5 = vadd.f32 %v1294_v4, %v1095_v0  ;;  %v1299_v6 = vmax.f32 %v1293_v2, 0.0  ;;  %v2860_v0 = vld [vmem:[%s3404_s11 + $0xa0] sm:$0xff]   ;;  %v2862_v2 = vld [vmem:[%s3404_s11 + $0x98] sm:$0xff]   ;;  %v2863_v4 = vld [vmem:[%s3404_s11 + $0xd0] sm:$0xff]  }
 0x2bb   : > { %v1296_v7 = vpop.f32.mrf.mxu1  ;;  %2555 = vmatpush3.bf16.msra.mxu1 %v2860_v0 }
 0x2bc   : > { %v1300_v8 = vmax.f32 %v1295_v5, 0.0  ;;  %v1301_v12 = vpack.c.bf16 %v1299_v6, %v1299_v6  ;;  %2556 = vmatprep.subr.bf16.mxu1 %v2861_v1  ;;  %v2864_v5 = vld [vmem:[%s3404_s11 + $0x90] sm:$0xff]   ;;  %v2865_v6 = vld [vmem:[%s3404_s11 + $0xc8] sm:$0xff]  }
 0x2bd   : > { %v1297_v9 = vpop.f32.mrf.mxu1  ;;  %v2866_v7 = vld [vmem:[%s3404_s11 + $0x88] sm:$0xff]  }
 0x2be   : > { %v1302_v10 = vpack.c.bf16 %v1300_v8, %v1300_v8  ;;  %v2867_v8 = vld [vmem:[%s3404_s11 + $0xc0] sm:$0xff]  }
 0x2bf   : > { %2557 = vmatpush3.bf16.msra.mxu1 %v2862_v2  ;;  %v2868_v9 = vld [vmem:[%s3404_s11 + $0x80] sm:$0xff]  }
 0x2c0   : > { %1470 = vmatprep.mubr.bf16.mxu0 %v1302_v10  ;;  %2558 = vmatprep.subr.bf16.mxu1 %v2863_v4  ;;  %v2165_v10 = vsel %vm2164_vm4, 1, %v3001_v3 }
 0x2c1   : > { %1471 = vmatmul.mubr.bf16.vlgmr.msra.gmra.mxu0 %v1301_v12  ;;  %2167 = vperm.xlu0 %2626, %v2165_v10  }
 0x2c2   : > { %1943 = vmatpush1.bf16.msra.mxu0 %v2805_v11 }
 0x2c3   : > { %1944 = vmatprep.subr.bf16.mxu0 %v2810_v13  ;;  %2559 = vmatpush3.bf16.msra.mxu1 %v2864_v5 }
 0x2c4   : > { %2560 = vmatprep.subr.bf16.mxu1 %v2865_v6 }
 0x2c6   : > { %1945 = vmatpush1.bf16.msra.mxu0 %v2808_v14 }
 0x2c7   : > { %1946 = vmatprep.subr.bf16.mxu0 %v2813_v15  ;;  %2561 = vmatpush3.bf16.msra.mxu1 %v2866_v7 }
 0x2c8   : > { %2562 = vmatprep.subr.bf16.mxu1 %v2867_v8 }
 0x2ca   : > { %1947 = vmatpush1.bf16.msra.mxu0 %v2811_v16  ;;  %v2438_v16 = vld [vmem:[%s3403_s10 + $0x2] sm:$0x3] }
 0x2cb   : > { %1948 = vmatprep.subr.bf16.mxu0 %v2816_v18  ;;  %2563 = vmatpush3.bf16.msra.mxu1 %v2868_v9  ;;  %v1775_v18 = vrot.slane %v2438_v16, %v3215_v20 }
 0x2ce   : > { %1949 = vmatpush1.bf16.msra.mxu0 %v2814_v19  ;;  %v1779_v19 = vrot.slane %v2438_v16, %v3223_v23  ;;  %v2504_v23 = vld [vmem:[%s3405_s12 + $0x1] ss:$0 sm:$0xff] }
 0x2cf   : > { %1950 = vmatprep.subr.bf16.mxu0 %v2819_v21 }
 0x2d2   : > { %1951 = vmatpush1.bf16.msra.mxu0 %v2817_v24 }
 0x2d3   : > { %1952 = vmatprep.subr.bf16.mxu0 %v2822_v25 }
 0x2d6   : > { %1953 = vmatpush1.bf16.msra.mxu0 %v2820_v26 }
 0x2d7   : > { %1954 = vmatprep.subr.bf16.mxu0 %v2825_v27 }
 0x2da   : > { %1955 = vmatpush1.bf16.msra.mxu0 %v2823_v28 }
 0x2db   : > { %1956 = vmatprep.subr.bf16.mxu0 %v2828_v29 }
 0x2de   : > { %1957 = vmatpush1.bf16.msra.mxu0 %v2826_v30 }
 0x2df   : > { %1958 = vmatprep.subr.bf16.mxu0 %v2831_v31  ;;  %v2388_v31 = vld [vmem:[%s3405_s12] ss:$0 sm:$0xff] }
 0x2e2   : > { %1959 = vmatpush2.bf16.msra.mxu0 %v2829_v32  ;;  %v1482_v32 = vpop.permute.xlu0 %1481 }
 0x2e3   : > { %1960 = vmatprep.subr.bf16.mxu0 %v2834_v33  ;;  %vm1483_vm5 = vcmp.eq.s32.totalorder %v1482_v32, 1 }
 0x2e6   : > { %1961 = vmatpush2.bf16.msra.mxu0 %v2832_v34 }
 0x2e7   : > { %1962 = vmatprep.subr.bf16.mxu0 %v2837_v35 }
 0x2ea   : > { %1963 = vmatpush2.bf16.msra.mxu0 %v2835_v36 }
 0x2eb   : > { %1964 = vmatprep.subr.bf16.mxu0 %v2840_v37 }
 0x2ee   : > { %1965 = vmatpush2.bf16.msra.mxu0 %v2838_v38 }
 0x2ef   : > { %1966 = vmatprep.subr.bf16.mxu0 %v2843_v39  ;;  %v2869_v39 = vld [vmem:[#allocation2] sm:$0xff] }
 0x2f2   : > { %1967 = vmatpush2.bf16.msra.mxu0 %v2841_v40 }
 0x2f3   : > { %1968 = vmatprep.subr.bf16.mxu0 %v2846_v41 }
 0x2f6   : > { %1969 = vmatpush2.bf16.msra.mxu0 %v2844_v42 }
 0x2f7   : > { %v1727_v49 = vpop.f32.mrf.mxu1  ;;  %1970 = vmatprep.subr.bf16.mxu0 %v2849_v43 }
 0x2f8   : > { %v1728_v54 = vadd.f32 %v1727_v49, %v1526_v48 }
 0x2f9   : > { %v1729_v51 = vpop.f32.mrf.mxu1 }
 0x2fa   : > { %v1730_v52 = vadd.f32 %v1729_v51, %v1530_v45  ;;  %1971 = vmatpush2.bf16.msra.mxu0 %v2847_v46  ;;  %v1734_v22 = vpack.c.bf16 %v1728_v54, %v1728_v54 }
 0x2fb   : > { %v1731_v55 = vpop.f32.mrf.mxu1  ;;  %1972 = vmatprep.subr.bf16.mxu0 %v2852_v50 }
 0x2fc   : > { %v1735_v56 = vpack.c.bf16 %v1730_v52, %v1730_v52 }
 0x2fd   : > { %v1732_v17 = vpop.f32.mrf.mxu1 }
 0x2fe   : > { %1973 = vmatpush2.bf16.msra.mxu0 %v2850_v53  ;;  %1974 = vmatprep.mubr.bf16.mxu0 %v1735_v56 }
 0x301   : > { %1975 = vmatmul.mubr.bf16.vlgmr.msra.gmra.mxu0 %v1734_v22 }
 0x33c   : > { %v2168_v35 = vpop.permute.xlu0 %2167 }
 0x33d   : > { %vm2169_vm6 = vcmp.eq.s32.totalorder %v2168_v35, 1 }
 0x381   : > { %v2542_v11 = vpop.f32.mrf.mxu0 }
 0x383   : > { %v2543_v12 = vpop.f32.mrf.mxu0 }
 0x384   : > { %v2544_v13 = vadd.f32 %v2543_v12, %v2542_v11 }
 0x385   : > { %v2545_v14 = vpop.f32.mrf.mxu0 }
 0x386   : > { %v1473_v33 = vadd.f32 %v2544_v13, %v2388_v31 }
 0x387   : > { %v2546_v15 = vpop.f32.mrf.mxu0 }
 0x388   : > { %v1484_v40 = vsel %vm1483_vm5, %v1473_v33, %v2869_v39 }
 0x3c1   : > { %v1976_v21 = vpop.f32.mrf.mxu0 }
 0x3c2   : > { %v1977_v24 = vadd.f32 %v1976_v21, %v1775_v18 }
 0x3c3   : > { %v1978_v25 = vpop.f32.mrf.mxu0 }
 0x3c4   : > { %v1979_v60 = vadd.f32 %v1978_v25, %v1779_v19  ;;  %v1983_v26 = vmax.f32 %v1977_v24, 0.0 }
 0x3c5   : > { %v1980_v3 = vpop.f32.mrf.mxu0 }
 0x3c6   : > { %v1984_v27 = vmax.f32 %v1979_v60, 0.0  ;;  %v1985_v30 = vpack.c.bf16 %v1983_v26, %v1983_v26 }
 0x3c7   : > { %v1981_v28 = vpop.f32.mrf.mxu0 }
 0x3c8   : > { %v1986_v29 = vpack.c.bf16 %v1984_v27, %v1984_v27 }
 0x3ca   : > { %2156 = vmatprep.mubr.bf16.mxu1 %v1986_v29 }
 0x3cb   : > { %2157 = vmatmul.mubr.bf16.vlgmr.msra.gmra.mxu1 %v1985_v30 }
 0x48b   : > { %v2564_v20 = vpop.f32.mrf.mxu1 }
 0x48d   : > { %v2565_v34 = vpop.f32.mrf.mxu1 }
 0x48e   : > { %v2566_v36 = vadd.f32 %v2565_v34, %v2564_v20 }
 0x48f   : > { %v2567_v37 = vpop.f32.mrf.mxu1 }
 0x490   : > { %v2159_v38 = vadd.f32 %v2566_v36, %v2504_v23 }
 0x491   : > { %v2568_v41 = vpop.f32.mrf.mxu1 }
 0x492   : > { %v2170_v42 = vsel %vm2169_vm6, %v2159_v38, %v1484_v40 }
 0x493   : > { %2171 = vst.msk [vmem:[#allocation2] sm:$0xff] %vm689_vm2, %v2170_v42 }
 0x494 PF: > { %p2521_p11 = scmp.ne.s32.totalorder %s2986_s30, 2 }
 0x496   : > { %2175 = sbr.rel (%p2521_p11) target bundleno = 1183 (0x49f), region = 88 }
 0x49b   : > { %v2176_v43 = vld [vmem:[#allocation2] sm:$0xff]  ;;  %vm2178_vm7 = vcmask 261120  }
 0x49c   : > { %v2177_v44 = vmax.f32 %v2176_v43, 0.0 }
 0x49e   : > { %2179 = vst.msk [vmem:[#allocation10] sm:$0xff] %vm2178_vm7, %v2177_v44 }
 0x49f PF: > { %p3369_p3 = scmp.eq.s32.totalorder %s2294_s15, 2  ;;  %s3002_s27 = smov [#allocation10]  }
 0x4a0   : > { %s2189_s18 = sshll.u32 %s3002_s27, 4  ;;  %s2190_s18 = int_to_ptr.vmem [resolvable:$true] %s2189_s18 }
 0x4a1   : > { %s2934_s29 = scalar_lea.vmem %s2190_s18, 128  ;;  %p2941_p7 = scmp.lt.s32.totalorder %s2190_s18, %s2190_s18 }
 0x4a2   : > { %p2935_p4 = scmp.ne.s32.totalorder %s2190_s18, %s2934_s29  ;;  %p2942_p10 = scmp.lt.s32.totalorder %s2934_s29, %s2934_s29 }
 0x4a4   : > { %p2936_p5 = pnand %p2935_p4, %p3369_p3  ;;  %p2943_p13 = por %p2942_p10, %p2941_p7 }
 0x4a6   : > { %p2937_p6 = pneg %p2936_p5 }
 0x4a8   : > { %p2944_p0 = pnand %p2943_p13, %p2937_p6 }
 0x4aa   : > { %2947 = shalt.err (!%p2944_p0)
}
 0x4ab   : > { %2579 = dma.vmem_to_hbm [thread:$0]  (%p3369_p3), %s2190_s18, 128, %s3406_s13, [#allocation7]  }
 0x4ac   : > { %2981 = dma.done.wait (%p3369_p3), [#allocation7], 128  }
 0x4ad   : > { %2983 = vsyncadd (%p3369_p3), [#allocation7], 4294967168 }
 0x4ae PF: > { %s32_s0 = sadd.s32 1, %s2994_s0   ;;  %s3411_s30 = smov %s2990_s14 }
 0x4af   : > { %p29_p2 = scmp.ge.s32.totalorder %s32_s0, 5   ;;  %s3412_s14 = smov %s3414_s16 }
 0x4b1   :  { %31 = sbr.rel (!%p29_p2) target bundleno = 19 (0x13), region = 129 }
 0x4b6   :  { %2202 = vsyncpa [#allocation6], 1 }
 0x4b7   :  { %2204 = vsyncpa [#allocation6 + $0x1], 1 }
 0x4b8   :  { %2205 = vsyncpa [#allocation9], 1 }
 0x4b9   :  { %2206 = vsyncpa [#allocation7], 1 }
 0x4ba   :  { %2208 = vsyncpa [#allocation7 + $0x1], 1 }

</bundles_post_ra>
